<compile_context>
chip_gen: v7x
topology: tpu7x:2x2x1
jax: 0.10.0
libtpu: 0.0.40
codegen_flags: <defaults>
</compile_context>

<pallas_src>
import math
import functools

import jax
import jax.numpy as jnp
from jax import lax
from jax.experimental import pallas as pl
from jax.experimental.pallas import tpu as pltpu


_LANE = 128
_SUBLANE = 8
_NEG_PAD = -1e9          # bias padding for padded vocab columns (softmax-safe)


def _round_up(x, m):
    return ((x + m - 1) // m) * m


def _i32_const(v):
    """Host-side: wrap an arbitrary 32-bit pattern into a signed int32 const."""
    v &= 0xFFFFFFFF
    if v >= (1 << 31):
        v -= 1 << 32
    return jnp.int32(v)


# ----------------------------------------------------------------------------
# Pallas kernel: one (batch-tile, time-chunk) grid step.
#   - hoisted gi = X @ W_ih for the whole chunk (one MXU matmul)
#   - sequential GRU recurrence (only h @ W_hh stays in the loop)
#   - in-kernel hash-based dropout + hoisted FC + lane-dense slab store
# ----------------------------------------------------------------------------
def _gru_fc_kernel(seed_ref, x_ref, wih_ref, whh_ref, bih_ref, bhh_ref,
                   wfc_ref, bfc_ref, out_ref, h_ref, gi_ref, hbuf_ref, *,
                   t_chunk, b_tile, h_pad, dropout_p, use_dropout,
                   apply_softmax):
    H = h_pad
    Bt = b_tile
    TB = t_chunk * b_tile
    E = x_ref.shape[-1]

    # Fresh hidden state at the first time-chunk of every batch tile.
    @pl.when(pl.program_id(1) == 0)
    def _():
        h_ref[...] = jnp.zeros_like(h_ref)

    # ---- hoisted input projection for the whole chunk (one big MXU matmul) ---
    x2d = x_ref[...].reshape(TB, E)
    gi_ref[...] = (
        jnp.dot(x2d.astype(jnp.bfloat16), wih_ref[...],
                preferred_element_type=jnp.float32)
        + bih_ref[...])

    # Loop-invariant operands hoisted (avoid per-step re-broadcast / re-load).
    whh = whh_ref[...]
    bhh = jnp.broadcast_to(bhh_ref[...], (Bt, 3 * H))

    # ---- sequential GRU recurrence (only the truly serial part) --------------
    def step(t, h):
        row = pl.multiple_of(t * Bt, Bt)
        gi = gi_ref[pl.ds(row, Bt), :]                                 # (Bt,3H)
        gh = jnp.dot(h.astype(jnp.bfloat16), whh,
                     preferred_element_type=jnp.float32) + bhh         # (Bt,3H)
        # PyTorch GRU gate order: r, z, n (slices are 128-lane aligned).
        r = jax.nn.sigmoid(gi[:, 0:H] + gh[:, 0:H])
        z = jax.nn.sigmoid(gi[:, H:2 * H] + gh[:, H:2 * H])
        n = jnp.tanh(gi[:, 2 * H:3 * H] + r * gh[:, 2 * H:3 * H])
        h_new = (1.0 - z) * n + z * h
        hbuf_ref[pl.ds(row, Bt), :] = h_new
        return h_new

    h_final = lax.fori_loop(0, t_chunk, step, h_ref[...],
                            unroll=(t_chunk <= 16))
    h_ref[...] = h_final                     # carry across time chunks

    # ---- dropout (in-kernel hash PRNG) + hoisted FC over the whole chunk -----
    hidden = hbuf_ref[...]                                             # (TB,H)
    if use_dropout:
        # Counter unique per (tile, element); mixed with the seed, then a
        # murmur3-style integer finalizer (pure jnp int32 ops -> lowers on
        # both Mosaic and the interpreter; no HBM mask stream).
        tile_id = pl.program_id(0) * pl.num_programs(1) + pl.program_id(1)
        base = (tile_id * jnp.int32(TB * H)
                + seed_ref[0] * _i32_const(0x9E3779B9))
        row = lax.broadcasted_iota(jnp.int32, (TB, H), 0)
        col = lax.broadcasted_iota(jnp.int32, (TB, H), 1)
        hsh = base + row * jnp.int32(H) + col
        hsh = hsh ^ (hsh >> 16)
        hsh = hsh * _i32_const(0x7FEB352D)
        hsh = hsh ^ (hsh >> 15)
        hsh = hsh * _i32_const(0x846CA68B)
        hsh = hsh ^ (hsh >> 16)
        # low 24 bits -> uniform in [0, 1)
        u = (hsh & jnp.int32(0x00FFFFFF)).astype(jnp.float32) * jnp.float32(
            2.0 ** -24)
        keep = (u >= jnp.float32(dropout_p)).astype(jnp.float32)
        hidden = hidden * (keep * jnp.float32(1.0 / (1.0 - dropout_p)))

    logits = (jnp.dot(hidden.astype(jnp.bfloat16), wfc_ref[...],
                      preferred_element_type=jnp.float32)
              + bfc_ref[...])                                          # (TB,Vp)

    if apply_softmax:
        logits = logits - jnp.max(logits, axis=-1, keepdims=True)
        e = jnp.exp(logits)
        logits = e * pl.reciprocal(jnp.sum(e, axis=-1, keepdims=True),
                                   approx=True)

    # Single lane-dense slab store for the whole chunk.
    out_ref[...] = logits.reshape(t_chunk, Bt, logits.shape[-1]).astype(
        out_ref.dtype)


def _vmem_bytes_estimate(t_chunk, b_tile, e, h_pad, v_pad):
    f32, bf16 = 4, 2
    stream = 2 * t_chunk * b_tile * (e + v_pad) * f32          # x + out (x2 buf)
    weights = 2 * ((e + h_pad) * 3 * h_pad * bf16
                   + 2 * 3 * h_pad * f32
                   + h_pad * v_pad * bf16 + v_pad * f32)
    scratch = (b_tile * h_pad
               + t_chunk * b_tile * (3 * h_pad + h_pad)) * f32
    return stream + weights + scratch


# ----------------------------------------------------------------------------
# Wrapper: embedding gather (glue), padding to TPU-friendly shapes, pallas_call
# ----------------------------------------------------------------------------
def surname_generation_forward(x_in, params, *, dropout_p=0.5, training=True,
                               apply_softmax=False, dropout_seed=0,
                               t_chunk=None):
    """x_in: (B, T) int32 token indices. Returns (B, T, V) float32 logits."""
    emb = params["emb"]
    w_ih, w_hh = params["w_ih"], params["w_hh"]
    b_ih, b_hh = params["b_ih"], params["b_hh"]
    w_fc, b_fc = params["w_fc"], params["b_fc"]

    B, T = x_in.shape
    V, E = emb.shape
    H = w_hh.shape[0]

    # ---- TPU-aligned geometry ------------------------------------------------
    H_pad = _round_up(H, _LANE)          # gate slices become lane-group aligned
    V_pad = _round_up(V, _LANE)          # lane-dense (unmasked) logit stores
    B_tile = min(_round_up(B, _SUBLANE), 128)
    B_pad = _round_up(B, B_tile)
    if t_chunk is None:
        t_chunk = min(32, _round_up(T, _SUBLANE))
    T_pad = _round_up(T, t_chunk)
    nb, nt = B_pad // B_tile, T_pad // t_chunk
    TB = t_chunk * B_tile

    # ---- glue: embedding gather + time-major layout + zero padding -----------
    # TODO(synk): the embedding gather stays in XLA (table lookup has no clean
    #             rectangular BlockSpec form); everything downstream is Pallas.
    x_emb = emb[x_in].astype(jnp.float32)                 # (B, T, E)
    x_tm = jnp.transpose(x_emb, (1, 0, 2))                # (T, B, E)
    x_tm = jnp.pad(x_tm, ((0, T_pad - T), (0, B_pad - B), (0, 0)))

    # ---- pad weights (per-gate padding keeps the r|z|n block structure) ------
    def pad_gate_cols(w):                 # (..., 3H) -> (..., 3*H_pad)
        lead = w.shape[:-1]
        w3 = w.reshape(lead + (3, H))
        w3 = jnp.pad(w3, [(0, 0)] * len(lead) + [(0, 0), (0, H_pad - H)])
        return w3.reshape(lead + (3 * H_pad,))

    w_ih_p = pad_gate_cols(w_ih).astype(jnp.bfloat16)                   # (E,3Hp)
    w_hh_p = jnp.pad(pad_gate_cols(w_hh),
                     ((0, H_pad - H), (0, 0))).astype(jnp.bfloat16)     # (Hp,3Hp)
    b_ih_p = pad_gate_cols(b_ih.reshape(1, 3 * H)).astype(jnp.float32)  # (1,3Hp)
    b_hh_p = pad_gate_cols(b_hh.reshape(1, 3 * H)).astype(jnp.float32)  # (1,3Hp)
    w_fc_p = jnp.pad(w_fc, ((0, H_pad - H), (0, V_pad - V))
                     ).astype(jnp.bfloat16)                             # (Hp,Vp)
    b_fc_p = jnp.pad(b_fc.reshape(1, V).astype(jnp.float32),
                     ((0, 0), (0, V_pad - V)),
                     constant_values=_NEG_PAD)                          # (1,Vp)

    use_dropout = bool(training) and float(dropout_p) > 0.0
    seed_arr = jnp.asarray([dropout_seed], dtype=jnp.int32)

    kernel = functools.partial(
        _gru_fc_kernel,
        t_chunk=t_chunk, b_tile=B_tile, h_pad=H_pad,
        dropout_p=float(dropout_p), use_dropout=use_dropout,
        apply_softmax=bool(apply_softmax))

    grid_spec = pltpu.PrefetchScalarGridSpec(
        num_scalar_prefetch=1,                       # dropout seed -> SMEM
        grid=(nb, nt),                               # (batch tiles, time chunks)
        in_specs=[
            pl.BlockSpec((t_chunk, B_tile, E), lambda b, t, s: (t, b, 0)),
            pl.BlockSpec((E, 3 * H_pad), lambda b, t, s: (0, 0)),
            pl.BlockSpec((H_pad, 3 * H_pad), lambda b, t, s: (0, 0)),
            pl.BlockSpec((1, 3 * H_pad), lambda b, t, s: (0, 0)),
            pl.BlockSpec((1, 3 * H_pad), lambda b, t, s: (0, 0)),
            pl.BlockSpec((H_pad, V_pad), lambda b, t, s: (0, 0)),
            pl.BlockSpec((1, V_pad), lambda b, t, s: (0, 0)),
        ],
        out_specs=pl.BlockSpec((t_chunk, B_tile, V_pad),
                               lambda b, t, s: (t, b, 0)),
        scratch_shapes=[
            pltpu.VMEM((B_tile, H_pad), jnp.float32),        # carried h
            pltpu.VMEM((TB, 3 * H_pad), jnp.float32),        # hoisted gi chunk
            pltpu.VMEM((TB, H_pad), jnp.float32),            # hidden trajectory
        ],
    )

    vmem_limit = int(min(32 * 2 ** 20,
                         max(8 * 2 ** 20,
                             2 * _vmem_bytes_estimate(t_chunk, B_tile, E,
                                                      H_pad, V_pad))))

    out_tm = pl.pallas_call(
        kernel,
        out_shape=jax.ShapeDtypeStruct((T_pad, B_pad, V_pad), jnp.float32),
        grid_spec=grid_spec,
        compiler_params=pltpu.CompilerParams(
            dimension_semantics=("parallel", "arbitrary"),
            vmem_limit_bytes=vmem_limit),
    )(seed_arr, x_tm, w_ih_p, w_hh_p, b_ih_p, b_hh_p, w_fc_p, b_fc_p)

    out = out_tm[:T, :B, :V]                                  # drop padding
    return jnp.transpose(out, (1, 0, 2))                      # (B, T, V)


# ----------------------------------------------------------------------------
# Pure-JAX reference (eval mode; mirrors the kernel's bf16 matmul operands)
# ----------------------------------------------------------------------------
def _reference_forward(x_in, params, apply_softmax=False):
    emb = params["emb"]
    wih = params["w_ih"].astype(jnp.bfloat16)
    whh = params["w_hh"].astype(jnp.bfloat16)
    wfc = params["w_fc"].astype(jnp.bfloat16)
    bih, bhh, bfc = params["b_ih"], params["b_hh"], params["b_fc"]
    B, T = x_in.shape
    H = params["w_hh"].shape[0]
    x_emb = emb[x_in].astype(jnp.float32)
    h = jnp.zeros((B, H), jnp.float32)
    outs = []
    for t in range(T):
        xt = x_emb[:, t, :]
        gi = jnp.dot(xt.astype(jnp.bfloat16), wih,
                     preferred_element_type=jnp.float32) + bih
        gh = jnp.dot(h.astype(jnp.bfloat16), whh,
                     preferred_element_type=jnp.float32) + bhh
        r = jax.nn.sigmoid(gi[:, :H] + gh[:, :H])
        z = jax.nn.sigmoid(gi[:, H:2 * H] + gh[:, H:2 * H])
        n = jnp.tanh(gi[:, 2 * H:] + r * gh[:, 2 * H:])
        h = (1.0 - z) * n + z * h
        logits = jnp.dot(h.astype(jnp.bfloat16), wfc,
                         preferred_element_type=jnp.float32) + bfc
        if apply_softmax:
            logits = jax.nn.softmax(logits, axis=-1)
        outs.append(logits)
    return jnp.stack(outs, axis=1)                            # (B, T, V)


# ----------------------------------------------------------------------------
# Deterministic parameter init (shapes from the module's __init__)
# ----------------------------------------------------------------------------
def init_params(key, char_embedding_size, char_vocab_size, rnn_hidden_size,
                padding_idx=0):
    E, V, H = char_embedding_size, char_vocab_size, rnn_hidden_size
    ks = jax.random.split(key, 7)
    emb = jax.random.normal(ks[0], (V, E), jnp.float32)
    emb = emb.at[padding_idx].set(0.0)                        # padding_idx row
    bound = 1.0 / math.sqrt(H)
    # stored transposed relative to PyTorch: (in, 3H) / (H, 3H) for x @ W
    w_ih = jax.random.uniform(ks[1], (E, 3 * H), jnp.float32, -bound, bound)
    w_hh = jax.random.uniform(ks[2], (H, 3 * H), jnp.float32, -bound, bound)
    b_ih = jax.random.uniform(ks[3], (3 * H,), jnp.float32, -bound, bound)
    b_hh = jax.random.uniform(ks[4], (3 * H,), jnp.float32, -bound, bound)
    w_fc = jax.random.uniform(ks[5], (H, V), jnp.float32, -bound, bound)
    b_fc = jax.random.uniform(ks[6], (V,), jnp.float32, -bound, bound)
    return dict(emb=emb, w_ih=w_ih, w_hh=w_hh, b_ih=b_ih, b_hh=b_hh,
                w_fc=w_fc, b_fc=b_fc)


if __name__ == "__main__":
    # Small shapes consistent with the module's forward.
    B, T = 2, 8                 # batch, sequence length
    E, H, V = 16, 32, 32        # char_embedding_size, rnn_hidden_size, vocab
    dropout_p = 0.5

    root = jax.random.PRNGKey(0)
    k_param, k_data = jax.random.split(root, 2)

    params = init_params(k_param, E, V, H, padding_idx=0)
    x_in = jax.random.randint(k_data, (B, T), 0, V, dtype=jnp.int32)

    # 1) eval mode (no dropout): numerical check against the pure-JAX reference.
    out_eval = surname_generation_forward(
        x_in, params, dropout_p=dropout_p, training=False, apply_softmax=False)
    out_eval = jax.block_until_ready(out_eval)
    assert out_eval.shape == (B, T, V)
    ref = _reference_forward(x_in, params, apply_softmax=False)
    assert jnp.allclose(out_eval, ref, rtol=2e-3, atol=2e-3), \
        "mismatch vs reference (logits)"

    # 2) eval mode with softmax (exercises the approx-reciprocal path).
    out_sm = surname_generation_forward(
        x_in, params, dropout_p=dropout_p, training=False, apply_softmax=True)
    out_sm = jax.block_until_ready(out_sm)
    ref_sm = _reference_forward(x_in, params, apply_softmax=True)
    assert jnp.allclose(out_sm, ref_sm, rtol=1e-2, atol=1e-2), \
        "mismatch vs reference (softmax)"
    assert jnp.allclose(jnp.sum(out_sm, axis=-1), 1.0, atol=1e-2)

    # 3) training mode: in-kernel hash-based dropout.
    # TODO(synk): PyTorch's dropout RNG stream cannot be reproduced; verify
    #             determinism (same seed) and variation (different seed) instead.
    out_tr_a = surname_generation_forward(
        x_in, params, dropout_p=dropout_p, training=True, apply_softmax=False,
        dropout_seed=123)
    out_tr_b = surname_generation_forward(
        x_in, params, dropout_p=dropout_p, training=True, apply_softmax=False,
        dropout_seed=123)
    out_tr_c = surname_generation_forward(
        x_in, params, dropout_p=dropout_p, training=True, apply_softmax=False,
        dropout_seed=321)
    jax.block_until_ready((out_tr_a, out_tr_b, out_tr_c))
    assert jnp.all(jnp.isfinite(out_tr_a))
    assert jnp.array_equal(out_tr_a, out_tr_b), "same seed must reproduce"
    assert not jnp.allclose(out_tr_a, out_tr_c), "different seeds should differ"

    print("KERNEL_OK")
</pallas_src>

<mosaic_0001>
module attributes {stable_mosaic.version = 11 : i64} {
  func.func @_gru_fc_kernel(%arg0: i32, %arg1: i32, %arg2: memref<1xi32, #tpu.memory_space<smem>>, %arg3: memref<8x8x16xf32, #tpu.memory_space<vmem>>, %arg4: memref<16x384xbf16, #tpu.memory_space<vmem>>, %arg5: memref<128x384xbf16, #tpu.memory_space<vmem>>, %arg6: memref<1x384xf32, #tpu.memory_space<vmem>>, %arg7: memref<1x384xf32, #tpu.memory_space<vmem>>, %arg8: memref<128x128xbf16, #tpu.memory_space<vmem>>, %arg9: memref<1x128xf32, #tpu.memory_space<vmem>>, %arg10: memref<8x8x128xf32, #tpu.memory_space<vmem>>, %arg11: memref<8x128xf32, #tpu.memory_space<vmem>>, %arg12: memref<64x384xf32, #tpu.memory_space<vmem>>, %arg13: memref<64x128xf32, #tpu.memory_space<vmem>>) attributes {dimension_semantics = [#tpu.dimension_semantics<parallel>, #tpu.dimension_semantics<arbitrary>], iteration_bounds = array<i64: 1, 1>, scalar_prefetch = 1 : i64, scratch_operands = 3 : i64, tpu.core_type = #tpu.core_type<tc>, window_params = [{transform_indices = @transform_0, window_bounds = array<i64: 8, 8, 16>}, {pipeline_mode = #tpu.pipeline_mode<synchronous>, transform_indices = @transform_1, window_bounds = array<i64: 16, 384>}, {pipeline_mode = #tpu.pipeline_mode<synchronous>, transform_indices = @transform_2, window_bounds = array<i64: 128, 384>}, {pipeline_mode = #tpu.pipeline_mode<synchronous>, transform_indices = @transform_3, window_bounds = array<i64: 1, 384>}, {pipeline_mode = #tpu.pipeline_mode<synchronous>, transform_indices = @transform_4, window_bounds = array<i64: 1, 384>}, {pipeline_mode = #tpu.pipeline_mode<synchronous>, transform_indices = @transform_5, window_bounds = array<i64: 128, 128>}, {pipeline_mode = #tpu.pipeline_mode<synchronous>, transform_indices = @transform_6, window_bounds = array<i64: 1, 128>}, {transform_indices = @transform_7, window_bounds = array<i64: 8, 8, 128>}]} {
    %c0_i32 = arith.constant 0 : i32
    %0 = arith.cmpi eq, %arg1, %c0_i32 : i32
    %1 = arith.extui %0 : i1 to i32
    %c0_i32_0 = arith.constant 0 : i32
    %2 = arith.cmpi ne, %1, %c0_i32_0 : i32
    scf.if %2 {
      %cst_84 = arith.constant 0.000000e+00 : f32
      %307 = vector.broadcast %cst_84 : f32 to vector<8x128xf32>
      %c0_85 = arith.constant 0 : index
      %c0_86 = arith.constant 0 : index
      %308 = vector.load %arg11[%c0_85, %c0_86] : memref<8x128xf32, #tpu.memory_space<vmem>>, vector<8x128xf32>
      tpu.vector_store %arg11[%c0_85, %c0_86], %307 {strides = array<i32>} : memref<8x128xf32, #tpu.memory_space<vmem>>, vector<8x128xf32>,
    } else {
    }
    %c0 = arith.constant 0 : index
    %c0_1 = arith.constant 0 : index
    %c0_2 = arith.constant 0 : index
    %3 = vector.load %arg3[%c0, %c0_1, %c0_2] : memref<8x8x16xf32, #tpu.memory_space<vmem>>, vector<8x8x16xf32>
    %4 = vector.shape_cast %3 : vector<8x8x16xf32> to vector<64x16xf32>
    %5 = arith.truncf %4 : vector<64x16xf32> to vector<64x16xbf16>
    %c0_3 = arith.constant 0 : index
    %c0_4 = arith.constant 0 : index
    %6 = vector.load %arg4[%c0_3, %c0_4] : memref<16x384xbf16, #tpu.memory_space<vmem>>, vector<16x384xbf16>
    %cst = arith.constant dense<0.000000e+00> : vector<64x384xf32>
    %7 = tpu.matmul %5, %6, %cst {dimension_numbers = #tpu.dot_dimension_numbers<[1], [0], [0], [1], [0, 0, 1, 1], [], []>} : vector<64x16xbf16>, vector<16x384xbf16>, vector<64x384xf32> -> vector<64x384xf32>
    %c0_5 = arith.constant 0 : index
    %c0_6 = arith.constant 0 : index
    %8 = vector.load %arg6[%c0_5, %c0_6] : memref<1x384xf32, #tpu.memory_space<vmem>>, vector<1x384xf32>
    %9 = vector.broadcast %8 : vector<1x384xf32> to vector<64x384xf32>
    %10 = arith.addf %7, %9 : vector<64x384xf32>
    %c0_7 = arith.constant 0 : index
    %c0_8 = arith.constant 0 : index
    %11 = vector.load %arg12[%c0_7, %c0_8] : memref<64x384xf32, #tpu.memory_space<vmem>>, vector<64x384xf32>
    tpu.vector_store %arg12[%c0_7, %c0_8], %10 {strides = array<i32>} : memref<64x384xf32, #tpu.memory_space<vmem>>, vector<64x384xf32>,
    %c0_9 = arith.constant 0 : index
    %c0_10 = arith.constant 0 : index
    %12 = vector.load %arg5[%c0_9, %c0_10] : memref<128x384xbf16, #tpu.memory_space<vmem>>, vector<128x384xbf16>
    %c0_11 = arith.constant 0 : index
    %c0_12 = arith.constant 0 : index
    %13 = vector.load %arg7[%c0_11, %c0_12] : memref<1x384xf32, #tpu.memory_space<vmem>>, vector<1x384xf32>
    %14 = vector.shape_cast %13 : vector<1x384xf32> to vector<1x384xf32>
    %15 = vector.broadcast %14 : vector<1x384xf32> to vector<8x384xf32>
    %c0_13 = arith.constant 0 : index
    %c0_14 = arith.constant 0 : index
    %16 = vector.load %arg11[%c0_13, %c0_14] : memref<8x128xf32, #tpu.memory_space<vmem>>, vector<8x128xf32>
    %c0_i32_15 = arith.constant 0 : i32
    %c8_i32 = arith.constant 8 : i32
    %17 = arith.muli %c0_i32_15, %c8_i32 : i32
    %18 = tpu.assume_multiple %17, 8 : i32
    %19 = arith.index_cast %18 : i32 to index
    %c0_16 = arith.constant 0 : index
    %20 = vector.load %arg12[%19, %c0_16] : memref<64x384xf32, #tpu.memory_space<vmem>>, vector<8x384xf32>
    %21 = arith.truncf %16 : vector<8x128xf32> to vector<8x128xbf16>
    %cst_17 = arith.constant dense<0.000000e+00> : vector<8x384xf32>
    %22 = tpu.matmul %21, %12, %cst_17 {dimension_numbers = #tpu.dot_dimension_numbers<[1], [0], [0], [1], [0, 0, 1, 1], [], []>} : vector<8x128xbf16>, vector<128x384xbf16>, vector<8x384xf32> -> vector<8x384xf32>
    %23 = arith.addf %22, %15 : vector<8x384xf32>
    %24 = vector.extract_strided_slice %20 {offsets = [0, 0], sizes = [8, 128], strides = [1, 1]} : vector<8x384xf32> to vector<8x128xf32>
    %25 = vector.extract_strided_slice %23 {offsets = [0, 0], sizes = [8, 128], strides = [1, 1]} : vector<8x384xf32> to vector<8x128xf32>
    %26 = arith.addf %24, %25 : vector<8x128xf32>
    %27 = arith.negf %26 : vector<8x128xf32>
    %28 = math.exp %27 : vector<8x128xf32>
    %cst_18 = arith.constant 1.000000e+00 : f32
    %29 = vector.broadcast %cst_18 : f32 to vector<8x128xf32>
    %30 = arith.addf %29, %28 : vector<8x128xf32>
    %31 = arith.divf %29, %30 : vector<8x128xf32>
    %32 = vector.extract_strided_slice %20 {offsets = [0, 128], sizes = [8, 128], strides = [1, 1]} : vector<8x384xf32> to vector<8x128xf32>
    %33 = vector.extract_strided_slice %23 {offsets = [0, 128], sizes = [8, 128], strides = [1, 1]} : vector<8x384xf32> to vector<8x128xf32>
    %34 = arith.addf %32, %33 : vector<8x128xf32>
    %35 = arith.negf %34 : vector<8x128xf32>
    %36 = math.exp %35 : vector<8x128xf32>
    %cst_19 = arith.constant 1.000000e+00 : f32
    %37 = vector.broadcast %cst_19 : f32 to vector<8x128xf32>
    %38 = arith.addf %37, %36 : vector<8x128xf32>
    %39 = arith.divf %37, %38 : vector<8x128xf32>
    %40 = vector.extract_strided_slice %20 {offsets = [0, 256], sizes = [8, 128], strides = [1, 1]} : vector<8x384xf32> to vector<8x128xf32>
    %41 = vector.extract_strided_slice %23 {offsets = [0, 256], sizes = [8, 128], strides = [1, 1]} : vector<8x384xf32> to vector<8x128xf32>
    %42 = arith.mulf %31, %41 : vector<8x128xf32>
    %43 = arith.addf %40, %42 : vector<8x128xf32>
    %44 = math.tanh %43 : vector<8x128xf32>
    %cst_20 = arith.constant 1.000000e+00 : f32
    %45 = vector.broadcast %cst_20 : f32 to vector<8x128xf32>
    %46 = arith.subf %45, %39 : vector<8x128xf32>
    %47 = arith.mulf %46, %44 : vector<8x128xf32>
    %48 = arith.mulf %39, %16 : vector<8x128xf32>
    %49 = arith.addf %47, %48 : vector<8x128xf32>
    %50 = arith.index_cast %18 : i32 to index
    %c0_21 = arith.constant 0 : index
    %51 = vector.load %arg13[%50, %c0_21] : memref<64x128xf32, #tpu.memory_space<vmem>>, vector<8x128xf32>
    tpu.vector_store %arg13[%50, %c0_21], %49 {strides = array<i32>} : memref<64x128xf32, #tpu.memory_space<vmem>>, vector<8x128xf32>,
    %c1_i32 = arith.constant 1 : i32
    %c8_i32_22 = arith.constant 8 : i32
    %52 = arith.muli %c1_i32, %c8_i32_22 : i32
    %53 = tpu.assume_multiple %52, 8 : i32
    %54 = arith.index_cast %53 : i32 to index
    %c0_23 = arith.constant 0 : index
    %55 = vector.load %arg12[%54, %c0_23] : memref<64x384xf32, #tpu.memory_space<vmem>>, vector<8x384xf32>
    %56 = arith.truncf %49 : vector<8x128xf32> to vector<8x128xbf16>
    %cst_24 = arith.constant dense<0.000000e+00> : vector<8x384xf32>
    %57 = tpu.matmul %56, %12, %cst_24 {dimension_numbers = #tpu.dot_dimension_numbers<[1], [0], [0], [1], [0, 0, 1, 1], [], []>} : vector<8x128xbf16>, vector<128x384xbf16>, vector<8x384xf32> -> vector<8x384xf32>
    %58 = arith.addf %57, %15 : vector<8x384xf32>
    %59 = vector.extract_strided_slice %55 {offsets = [0, 0], sizes = [8, 128], strides = [1, 1]} : vector<8x384xf32> to vector<8x128xf32>
    %60 = vector.extract_strided_slice %58 {offsets = [0, 0], sizes = [8, 128], strides = [1, 1]} : vector<8x384xf32> to vector<8x128xf32>
    %61 = arith.addf %59, %60 : vector<8x128xf32>
    %62 = arith.negf %61 : vector<8x128xf32>
    %63 = math.exp %62 : vector<8x128xf32>
    %cst_25 = arith.constant 1.000000e+00 : f32
    %64 = vector.broadcast %cst_25 : f32 to vector<8x128xf32>
    %65 = arith.addf %64, %63 : vector<8x128xf32>
    %66 = arith.divf %64, %65 : vector<8x128xf32>
    %67 = vector.extract_strided_slice %55 {offsets = [0, 128], sizes = [8, 128], strides = [1, 1]} : vector<8x384xf32> to vector<8x128xf32>
    %68 = vector.extract_strided_slice %58 {offsets = [0, 128], sizes = [8, 128], strides = [1, 1]} : vector<8x384xf32> to vector<8x128xf32>
    %69 = arith.addf %67, %68 : vector<8x128xf32>
    %70 = arith.negf %69 : vector<8x128xf32>
    %71 = math.exp %70 : vector<8x128xf32>
    %cst_26 = arith.constant 1.000000e+00 : f32
    %72 = vector.broadcast %cst_26 : f32 to vector<8x128xf32>
    %73 = arith.addf %72, %71 : vector<8x128xf32>
    %74 = arith.divf %72, %73 : vector<8x128xf32>
    %75 = vector.extract_strided_slice %55 {offsets = [0, 256], sizes = [8, 128], strides = [1, 1]} : vector<8x384xf32> to vector<8x128xf32>
    %76 = vector.extract_strided_slice %58 {offsets = [0, 256], sizes = [8, 128], strides = [1, 1]} : vector<8x384xf32> to vector<8x128xf32>
    %77 = arith.mulf %66, %76 : vector<8x128xf32>
    %78 = arith.addf %75, %77 : vector<8x128xf32>
    %79 = math.tanh %78 : vector<8x128xf32>
    %cst_27 = arith.constant 1.000000e+00 : f32
    %80 = vector.broadcast %cst_27 : f32 to vector<8x128xf32>
    %81 = arith.subf %80, %74 : vector<8x128xf32>
    %82 = arith.mulf %81, %79 : vector<8x128xf32>
    %83 = arith.mulf %74, %49 : vector<8x128xf32>
    %84 = arith.addf %82, %83 : vector<8x128xf32>
    %85 = arith.index_cast %53 : i32 to index
    %c0_28 = arith.constant 0 : index
    %86 = vector.load %arg13[%85, %c0_28] : memref<64x128xf32, #tpu.memory_space<vmem>>, vector<8x128xf32>
    tpu.vector_store %arg13[%85, %c0_28], %84 {strides = array<i32>} : memref<64x128xf32, #tpu.memory_space<vmem>>, vector<8x128xf32>,
    %c2_i32 = arith.constant 2 : i32
    %c8_i32_29 = arith.constant 8 : i32
    %87 = arith.muli %c2_i32, %c8_i32_29 : i32
    %88 = tpu.assume_multiple %87, 8 : i32
    %89 = arith.index_cast %88 : i32 to index
    %c0_30 = arith.constant 0 : index
    %90 = vector.load %arg12[%89, %c0_30] : memref<64x384xf32, #tpu.memory_space<vmem>>, vector<8x384xf32>
    %91 = arith.truncf %84 : vector<8x128xf32> to vector<8x128xbf16>
    %cst_31 = arith.constant dense<0.000000e+00> : vector<8x384xf32>
    %92 = tpu.matmul %91, %12, %cst_31 {dimension_numbers = #tpu.dot_dimension_numbers<[1], [0], [0], [1], [0, 0, 1, 1], [], []>} : vector<8x128xbf16>, vector<128x384xbf16>, vector<8x384xf32> -> vector<8x384xf32>
    %93 = arith.addf %92, %15 : vector<8x384xf32>
    %94 = vector.extract_strided_slice %90 {offsets = [0, 0], sizes = [8, 128], strides = [1, 1]} : vector<8x384xf32> to vector<8x128xf32>
    %95 = vector.extract_strided_slice %93 {offsets = [0, 0], sizes = [8, 128], strides = [1, 1]} : vector<8x384xf32> to vector<8x128xf32>
    %96 = arith.addf %94, %95 : vector<8x128xf32>
    %97 = arith.negf %96 : vector<8x128xf32>
    %98 = math.exp %97 : vector<8x128xf32>
    %cst_32 = arith.constant 1.000000e+00 : f32
    %99 = vector.broadcast %cst_32 : f32 to vector<8x128xf32>
    %100 = arith.addf %99, %98 : vector<8x128xf32>
    %101 = arith.divf %99, %100 : vector<8x128xf32>
    %102 = vector.extract_strided_slice %90 {offsets = [0, 128], sizes = [8, 128], strides = [1, 1]} : vector<8x384xf32> to vector<8x128xf32>
    %103 = vector.extract_strided_slice %93 {offsets = [0, 128], sizes = [8, 128], strides = [1, 1]} : vector<8x384xf32> to vector<8x128xf32>
    %104 = arith.addf %102, %103 : vector<8x128xf32>
    %105 = arith.negf %104 : vector<8x128xf32>
    %106 = math.exp %105 : vector<8x128xf32>
    %cst_33 = arith.constant 1.000000e+00 : f32
    %107 = vector.broadcast %cst_33 : f32 to vector<8x128xf32>
    %108 = arith.addf %107, %106 : vector<8x128xf32>
    %109 = arith.divf %107, %108 : vector<8x128xf32>
    %110 = vector.extract_strided_slice %90 {offsets = [0, 256], sizes = [8, 128], strides = [1, 1]} : vector<8x384xf32> to vector<8x128xf32>
    %111 = vector.extract_strided_slice %93 {offsets = [0, 256], sizes = [8, 128], strides = [1, 1]} : vector<8x384xf32> to vector<8x128xf32>
    %112 = arith.mulf %101, %111 : vector<8x128xf32>
    %113 = arith.addf %110, %112 : vector<8x128xf32>
    %114 = math.tanh %113 : vector<8x128xf32>
    %cst_34 = arith.constant 1.000000e+00 : f32
    %115 = vector.broadcast %cst_34 : f32 to vector<8x128xf32>
    %116 = arith.subf %115, %109 : vector<8x128xf32>
    %117 = arith.mulf %116, %114 : vector<8x128xf32>
    %118 = arith.mulf %109, %84 : vector<8x128xf32>
    %119 = arith.addf %117, %118 : vector<8x128xf32>
    %120 = arith.index_cast %88 : i32 to index
    %c0_35 = arith.constant 0 : index
    %121 = vector.load %arg13[%120, %c0_35] : memref<64x128xf32, #tpu.memory_space<vmem>>, vector<8x128xf32>
    tpu.vector_store %arg13[%120, %c0_35], %119 {strides = array<i32>} : memref<64x128xf32, #tpu.memory_space<vmem>>, vector<8x128xf32>,
    %c3_i32 = arith.constant 3 : i32
    %c8_i32_36 = arith.constant 8 : i32
    %122 = arith.muli %c3_i32, %c8_i32_36 : i32
    %123 = tpu.assume_multiple %122, 8 : i32
    %124 = arith.index_cast %123 : i32 to index
    %c0_37 = arith.constant 0 : index
    %125 = vector.load %arg12[%124, %c0_37] : memref<64x384xf32, #tpu.memory_space<vmem>>, vector<8x384xf32>
    %126 = arith.truncf %119 : vector<8x128xf32> to vector<8x128xbf16>
    %cst_38 = arith.constant dense<0.000000e+00> : vector<8x384xf32>
    %127 = tpu.matmul %126, %12, %cst_38 {dimension_numbers = #tpu.dot_dimension_numbers<[1], [0], [0], [1], [0, 0, 1, 1], [], []>} : vector<8x128xbf16>, vector<128x384xbf16>, vector<8x384xf32> -> vector<8x384xf32>
    %128 = arith.addf %127, %15 : vector<8x384xf32>
    %129 = vector.extract_strided_slice %125 {offsets = [0, 0], sizes = [8, 128], strides = [1, 1]} : vector<8x384xf32> to vector<8x128xf32>
    %130 = vector.extract_strided_slice %128 {offsets = [0, 0], sizes = [8, 128], strides = [1, 1]} : vector<8x384xf32> to vector<8x128xf32>
    %131 = arith.addf %129, %130 : vector<8x128xf32>
    %132 = arith.negf %131 : vector<8x128xf32>
    %133 = math.exp %132 : vector<8x128xf32>
    %cst_39 = arith.constant 1.000000e+00 : f32
    %134 = vector.broadcast %cst_39 : f32 to vector<8x128xf32>
    %135 = arith.addf %134, %133 : vector<8x128xf32>
    %136 = arith.divf %134, %135 : vector<8x128xf32>
    %137 = vector.extract_strided_slice %125 {offsets = [0, 128], sizes = [8, 128], strides = [1, 1]} : vector<8x384xf32> to vector<8x128xf32>
    %138 = vector.extract_strided_slice %128 {offsets = [0, 128], sizes = [8, 128], strides = [1, 1]} : vector<8x384xf32> to vector<8x128xf32>
    %139 = arith.addf %137, %138 : vector<8x128xf32>
    %140 = arith.negf %139 : vector<8x128xf32>
    %141 = math.exp %140 : vector<8x128xf32>
    %cst_40 = arith.constant 1.000000e+00 : f32
    %142 = vector.broadcast %cst_40 : f32 to vector<8x128xf32>
    %143 = arith.addf %142, %141 : vector<8x128xf32>
    %144 = arith.divf %142, %143 : vector<8x128xf32>
    %145 = vector.extract_strided_slice %125 {offsets = [0, 256], sizes = [8, 128], strides = [1, 1]} : vector<8x384xf32> to vector<8x128xf32>
    %146 = vector.extract_strided_slice %128 {offsets = [0, 256], sizes = [8, 128], strides = [1, 1]} : vector<8x384xf32> to vector<8x128xf32>
    %147 = arith.mulf %136, %146 : vector<8x128xf32>
    %148 = arith.addf %145, %147 : vector<8x128xf32>
    %149 = math.tanh %148 : vector<8x128xf32>
    %cst_41 = arith.constant 1.000000e+00 : f32
    %150 = vector.broadcast %cst_41 : f32 to vector<8x128xf32>
    %151 = arith.subf %150, %144 : vector<8x128xf32>
    %152 = arith.mulf %151, %149 : vector<8x128xf32>
    %153 = arith.mulf %144, %119 : vector<8x128xf32>
    %154 = arith.addf %152, %153 : vector<8x128xf32>
    %155 = arith.index_cast %123 : i32 to index
    %c0_42 = arith.constant 0 : index
    %156 = vector.load %arg13[%155, %c0_42] : memref<64x128xf32, #tpu.memory_space<vmem>>, vector<8x128xf32>
    tpu.vector_store %arg13[%155, %c0_42], %154 {strides = array<i32>} : memref<64x128xf32, #tpu.memory_space<vmem>>, vector<8x128xf32>,
    %c4_i32 = arith.constant 4 : i32
    %c8_i32_43 = arith.constant 8 : i32
    %157 = arith.muli %c4_i32, %c8_i32_43 : i32
    %158 = tpu.assume_multiple %157, 8 : i32
    %159 = arith.index_cast %158 : i32 to index
    %c0_44 = arith.constant 0 : index
    %160 = vector.load %arg12[%159, %c0_44] : memref<64x384xf32, #tpu.memory_space<vmem>>, vector<8x384xf32>
    %161 = arith.truncf %154 : vector<8x128xf32> to vector<8x128xbf16>
    %cst_45 = arith.constant dense<0.000000e+00> : vector<8x384xf32>
    %162 = tpu.matmul %161, %12, %cst_45 {dimension_numbers = #tpu.dot_dimension_numbers<[1], [0], [0], [1], [0, 0, 1, 1], [], []>} : vector<8x128xbf16>, vector<128x384xbf16>, vector<8x384xf32> -> vector<8x384xf32>
    %163 = arith.addf %162, %15 : vector<8x384xf32>
    %164 = vector.extract_strided_slice %160 {offsets = [0, 0], sizes = [8, 128], strides = [1, 1]} : vector<8x384xf32> to vector<8x128xf32>
    %165 = vector.extract_strided_slice %163 {offsets = [0, 0], sizes = [8, 128], strides = [1, 1]} : vector<8x384xf32> to vector<8x128xf32>
    %166 = arith.addf %164, %165 : vector<8x128xf32>
    %167 = arith.negf %166 : vector<8x128xf32>
    %168 = math.exp %167 : vector<8x128xf32>
    %cst_46 = arith.constant 1.000000e+00 : f32
    %169 = vector.broadcast %cst_46 : f32 to vector<8x128xf32>
    %170 = arith.addf %169, %168 : vector<8x128xf32>
    %171 = arith.divf %169, %170 : vector<8x128xf32>
    %172 = vector.extract_strided_slice %160 {offsets = [0, 128], sizes = [8, 128], strides = [1, 1]} : vector<8x384xf32> to vector<8x128xf32>
    %173 = vector.extract_strided_slice %163 {offsets = [0, 128], sizes = [8, 128], strides = [1, 1]} : vector<8x384xf32> to vector<8x128xf32>
    %174 = arith.addf %172, %173 : vector<8x128xf32>
    %175 = arith.negf %174 : vector<8x128xf32>
    %176 = math.exp %175 : vector<8x128xf32>
    %cst_47 = arith.constant 1.000000e+00 : f32
    %177 = vector.broadcast %cst_47 : f32 to vector<8x128xf32>
    %178 = arith.addf %177, %176 : vector<8x128xf32>
    %179 = arith.divf %177, %178 : vector<8x128xf32>
    %180 = vector.extract_strided_slice %160 {offsets = [0, 256], sizes = [8, 128], strides = [1, 1]} : vector<8x384xf32> to vector<8x128xf32>
    %181 = vector.extract_strided_slice %163 {offsets = [0, 256], sizes = [8, 128], strides = [1, 1]} : vector<8x384xf32> to vector<8x128xf32>
    %182 = arith.mulf %171, %181 : vector<8x128xf32>
    %183 = arith.addf %180, %182 : vector<8x128xf32>
    %184 = math.tanh %183 : vector<8x128xf32>
    %cst_48 = arith.constant 1.000000e+00 : f32
    %185 = vector.broadcast %cst_48 : f32 to vector<8x128xf32>
    %186 = arith.subf %185, %179 : vector<8x128xf32>
    %187 = arith.mulf %186, %184 : vector<8x128xf32>
    %188 = arith.mulf %179, %154 : vector<8x128xf32>
    %189 = arith.addf %187, %188 : vector<8x128xf32>
    %190 = arith.index_cast %158 : i32 to index
    %c0_49 = arith.constant 0 : index
    %191 = vector.load %arg13[%190, %c0_49] : memref<64x128xf32, #tpu.memory_space<vmem>>, vector<8x128xf32>
    tpu.vector_store %arg13[%190, %c0_49], %189 {strides = array<i32>} : memref<64x128xf32, #tpu.memory_space<vmem>>, vector<8x128xf32>,
    %c5_i32 = arith.constant 5 : i32
    %c8_i32_50 = arith.constant 8 : i32
    %192 = arith.muli %c5_i32, %c8_i32_50 : i32
    %193 = tpu.assume_multiple %192, 8 : i32
    %194 = arith.index_cast %193 : i32 to index
    %c0_51 = arith.constant 0 : index
    %195 = vector.load %arg12[%194, %c0_51] : memref<64x384xf32, #tpu.memory_space<vmem>>, vector<8x384xf32>
    %196 = arith.truncf %189 : vector<8x128xf32> to vector<8x128xbf16>
    %cst_52 = arith.constant dense<0.000000e+00> : vector<8x384xf32>
    %197 = tpu.matmul %196, %12, %cst_52 {dimension_numbers = #tpu.dot_dimension_numbers<[1], [0], [0], [1], [0, 0, 1, 1], [], []>} : vector<8x128xbf16>, vector<128x384xbf16>, vector<8x384xf32> -> vector<8x384xf32>
    %198 = arith.addf %197, %15 : vector<8x384xf32>
    %199 = vector.extract_strided_slice %195 {offsets = [0, 0], sizes = [8, 128], strides = [1, 1]} : vector<8x384xf32> to vector<8x128xf32>
    %200 = vector.extract_strided_slice %198 {offsets = [0, 0], sizes = [8, 128], strides = [1, 1]} : vector<8x384xf32> to vector<8x128xf32>
    %201 = arith.addf %199, %200 : vector<8x128xf32>
    %202 = arith.negf %201 : vector<8x128xf32>
    %203 = math.exp %202 : vector<8x128xf32>
    %cst_53 = arith.constant 1.000000e+00 : f32
    %204 = vector.broadcast %cst_53 : f32 to vector<8x128xf32>
    %205 = arith.addf %204, %203 : vector<8x128xf32>
    %206 = arith.divf %204, %205 : vector<8x128xf32>
    %207 = vector.extract_strided_slice %195 {offsets = [0, 128], sizes = [8, 128], strides = [1, 1]} : vector<8x384xf32> to vector<8x128xf32>
    %208 = vector.extract_strided_slice %198 {offsets = [0, 128], sizes = [8, 128], strides = [1, 1]} : vector<8x384xf32> to vector<8x128xf32>
    %209 = arith.addf %207, %208 : vector<8x128xf32>
    %210 = arith.negf %209 : vector<8x128xf32>
    %211 = math.exp %210 : vector<8x128xf32>
    %cst_54 = arith.constant 1.000000e+00 : f32
    %212 = vector.broadcast %cst_54 : f32 to vector<8x128xf32>
    %213 = arith.addf %212, %211 : vector<8x128xf32>
    %214 = arith.divf %212, %213 : vector<8x128xf32>
    %215 = vector.extract_strided_slice %195 {offsets = [0, 256], sizes = [8, 128], strides = [1, 1]} : vector<8x384xf32> to vector<8x128xf32>
    %216 = vector.extract_strided_slice %198 {offsets = [0, 256], sizes = [8, 128], strides = [1, 1]} : vector<8x384xf32> to vector<8x128xf32>
    %217 = arith.mulf %206, %216 : vector<8x128xf32>
    %218 = arith.addf %215, %217 : vector<8x128xf32>
    %219 = math.tanh %218 : vector<8x128xf32>
    %cst_55 = arith.constant 1.000000e+00 : f32
    %220 = vector.broadcast %cst_55 : f32 to vector<8x128xf32>
    %221 = arith.subf %220, %214 : vector<8x128xf32>
    %222 = arith.mulf %221, %219 : vector<8x128xf32>
    %223 = arith.mulf %214, %189 : vector<8x128xf32>
    %224 = arith.addf %222, %223 : vector<8x128xf32>
    %225 = arith.index_cast %193 : i32 to index
    %c0_56 = arith.constant 0 : index
    %226 = vector.load %arg13[%225, %c0_56] : memref<64x128xf32, #tpu.memory_space<vmem>>, vector<8x128xf32>
    tpu.vector_store %arg13[%225, %c0_56], %224 {strides = array<i32>} : memref<64x128xf32, #tpu.memory_space<vmem>>, vector<8x128xf32>,
    %c6_i32 = arith.constant 6 : i32
    %c8_i32_57 = arith.constant 8 : i32
    %227 = arith.muli %c6_i32, %c8_i32_57 : i32
    %228 = tpu.assume_multiple %227, 8 : i32
    %229 = arith.index_cast %228 : i32 to index
    %c0_58 = arith.constant 0 : index
    %230 = vector.load %arg12[%229, %c0_58] : memref<64x384xf32, #tpu.memory_space<vmem>>, vector<8x384xf32>
    %231 = arith.truncf %224 : vector<8x128xf32> to vector<8x128xbf16>
    %cst_59 = arith.constant dense<0.000000e+00> : vector<8x384xf32>
    %232 = tpu.matmul %231, %12, %cst_59 {dimension_numbers = #tpu.dot_dimension_numbers<[1], [0], [0], [1], [0, 0, 1, 1], [], []>} : vector<8x128xbf16>, vector<128x384xbf16>, vector<8x384xf32> -> vector<8x384xf32>
    %233 = arith.addf %232, %15 : vector<8x384xf32>
    %234 = vector.extract_strided_slice %230 {offsets = [0, 0], sizes = [8, 128], strides = [1, 1]} : vector<8x384xf32> to vector<8x128xf32>
    %235 = vector.extract_strided_slice %233 {offsets = [0, 0], sizes = [8, 128], strides = [1, 1]} : vector<8x384xf32> to vector<8x128xf32>
    %236 = arith.addf %234, %235 : vector<8x128xf32>
    %237 = arith.negf %236 : vector<8x128xf32>
    %238 = math.exp %237 : vector<8x128xf32>
    %cst_60 = arith.constant 1.000000e+00 : f32
    %239 = vector.broadcast %cst_60 : f32 to vector<8x128xf32>
    %240 = arith.addf %239, %238 : vector<8x128xf32>
    %241 = arith.divf %239, %240 : vector<8x128xf32>
    %242 = vector.extract_strided_slice %230 {offsets = [0, 128], sizes = [8, 128], strides = [1, 1]} : vector<8x384xf32> to vector<8x128xf32>
    %243 = vector.extract_strided_slice %233 {offsets = [0, 128], sizes = [8, 128], strides = [1, 1]} : vector<8x384xf32> to vector<8x128xf32>
    %244 = arith.addf %242, %243 : vector<8x128xf32>
    %245 = arith.negf %244 : vector<8x128xf32>
    %246 = math.exp %245 : vector<8x128xf32>
    %cst_61 = arith.constant 1.000000e+00 : f32
    %247 = vector.broadcast %cst_61 : f32 to vector<8x128xf32>
    %248 = arith.addf %247, %246 : vector<8x128xf32>
    %249 = arith.divf %247, %248 : vector<8x128xf32>
    %250 = vector.extract_strided_slice %230 {offsets = [0, 256], sizes = [8, 128], strides = [1, 1]} : vector<8x384xf32> to vector<8x128xf32>
    %251 = vector.extract_strided_slice %233 {offsets = [0, 256], sizes = [8, 128], strides = [1, 1]} : vector<8x384xf32> to vector<8x128xf32>
    %252 = arith.mulf %241, %251 : vector<8x128xf32>
    %253 = arith.addf %250, %252 : vector<8x128xf32>
    %254 = math.tanh %253 : vector<8x128xf32>
    %cst_62 = arith.constant 1.000000e+00 : f32
    %255 = vector.broadcast %cst_62 : f32 to vector<8x128xf32>
    %256 = arith.subf %255, %249 : vector<8x128xf32>
    %257 = arith.mulf %256, %254 : vector<8x128xf32>
    %258 = arith.mulf %249, %224 : vector<8x128xf32>
    %259 = arith.addf %257, %258 : vector<8x128xf32>
    %260 = arith.index_cast %228 : i32 to index
    %c0_63 = arith.constant 0 : index
    %261 = vector.load %arg13[%260, %c0_63] : memref<64x128xf32, #tpu.memory_space<vmem>>, vector<8x128xf32>
    tpu.vector_store %arg13[%260, %c0_63], %259 {strides = array<i32>} : memref<64x128xf32, #tpu.memory_space<vmem>>, vector<8x128xf32>,
    %c7_i32 = arith.constant 7 : i32
    %c8_i32_64 = arith.constant 8 : i32
    %262 = arith.muli %c7_i32, %c8_i32_64 : i32
    %263 = tpu.assume_multiple %262, 8 : i32
    %264 = arith.index_cast %263 : i32 to index
    %c0_65 = arith.constant 0 : index
    %265 = vector.load %arg12[%264, %c0_65] : memref<64x384xf32, #tpu.memory_space<vmem>>, vector<8x384xf32>
    %266 = arith.truncf %259 : vector<8x128xf32> to vector<8x128xbf16>
    %cst_66 = arith.constant dense<0.000000e+00> : vector<8x384xf32>
    %267 = tpu.matmul %266, %12, %cst_66 {dimension_numbers = #tpu.dot_dimension_numbers<[1], [0], [0], [1], [0, 0, 1, 1], [], []>} : vector<8x128xbf16>, vector<128x384xbf16>, vector<8x384xf32> -> vector<8x384xf32>
    %268 = arith.addf %267, %15 : vector<8x384xf32>
    %269 = vector.extract_strided_slice %265 {offsets = [0, 0], sizes = [8, 128], strides = [1, 1]} : vector<8x384xf32> to vector<8x128xf32>
    %270 = vector.extract_strided_slice %268 {offsets = [0, 0], sizes = [8, 128], strides = [1, 1]} : vector<8x384xf32> to vector<8x128xf32>
    %271 = arith.addf %269, %270 : vector<8x128xf32>
    %272 = arith.negf %271 : vector<8x128xf32>
    %273 = math.exp %272 : vector<8x128xf32>
    %cst_67 = arith.constant 1.000000e+00 : f32
    %274 = vector.broadcast %cst_67 : f32 to vector<8x128xf32>
    %275 = arith.addf %274, %273 : vector<8x128xf32>
    %276 = arith.divf %274, %275 : vector<8x128xf32>
    %277 = vector.extract_strided_slice %265 {offsets = [0, 128], sizes = [8, 128], strides = [1, 1]} : vector<8x384xf32> to vector<8x128xf32>
    %278 = vector.extract_strided_slice %268 {offsets = [0, 128], sizes = [8, 128], strides = [1, 1]} : vector<8x384xf32> to vector<8x128xf32>
    %279 = arith.addf %277, %278 : vector<8x128xf32>
    %280 = arith.negf %279 : vector<8x128xf32>
    %281 = math.exp %280 : vector<8x128xf32>
    %cst_68 = arith.constant 1.000000e+00 : f32
    %282 = vector.broadcast %cst_68 : f32 to vector<8x128xf32>
    %283 = arith.addf %282, %281 : vector<8x128xf32>
    %284 = arith.divf %282, %283 : vector<8x128xf32>
    %285 = vector.extract_strided_slice %265 {offsets = [0, 256], sizes = [8, 128], strides = [1, 1]} : vector<8x384xf32> to vector<8x128xf32>
    %286 = vector.extract_strided_slice %268 {offsets = [0, 256], sizes = [8, 128], strides = [1, 1]} : vector<8x384xf32> to vector<8x128xf32>
    %287 = arith.mulf %276, %286 : vector<8x128xf32>
    %288 = arith.addf %285, %287 : vector<8x128xf32>
    %289 = math.tanh %288 : vector<8x128xf32>
    %cst_69 = arith.constant 1.000000e+00 : f32
    %290 = vector.broadcast %cst_69 : f32 to vector<8x128xf32>
    %291 = arith.subf %290, %284 : vector<8x128xf32>
    %292 = arith.mulf %291, %289 : vector<8x128xf32>
    %293 = arith.mulf %284, %259 : vector<8x128xf32>
    %294 = arith.addf %292, %293 : vector<8x128xf32>
    %295 = arith.index_cast %263 : i32 to index
    %c0_70 = arith.constant 0 : index
    %296 = vector.load %arg13[%295, %c0_70] : memref<64x128xf32, #tpu.memory_space<vmem>>, vector<8x128xf32>
    tpu.vector_store %arg13[%295, %c0_70], %294 {strides = array<i32>} : memref<64x128xf32, #tpu.memory_space<vmem>>, vector<8x128xf32>,
    %c8_i32_71 = arith.constant 8 : i32
    %c0_72 = arith.constant 0 : index
    %c0_73 = arith.constant 0 : index
    %297 = vector.load %arg11[%c0_72, %c0_73] : memref<8x128xf32, #tpu.memory_space<vmem>>, vector<8x128xf32>
    tpu.vector_store %arg11[%c0_72, %c0_73], %294 {strides = array<i32>} : memref<8x128xf32, #tpu.memory_space<vmem>>, vector<8x128xf32>,
    %c0_74 = arith.constant 0 : index
    %c0_75 = arith.constant 0 : index
    %298 = vector.load %arg13[%c0_74, %c0_75] : memref<64x128xf32, #tpu.memory_space<vmem>>, vector<64x128xf32>
    %299 = arith.truncf %298 : vector<64x128xf32> to vector<64x128xbf16>
    %c0_76 = arith.constant 0 : index
    %c0_77 = arith.constant 0 : index
    %300 = vector.load %arg8[%c0_76, %c0_77] : memref<128x128xbf16, #tpu.memory_space<vmem>>, vector<128x128xbf16>
    %cst_78 = arith.constant dense<0.000000e+00> : vector<64x128xf32>
    %301 = tpu.matmul %299, %300, %cst_78 {dimension_numbers = #tpu.dot_dimension_numbers<[1], [0], [0], [1], [0, 0, 1, 1], [], []>} : vector<64x128xbf16>, vector<128x128xbf16>, vector<64x128xf32> -> vector<64x128xf32>
    %c0_79 = arith.constant 0 : index
    %c0_80 = arith.constant 0 : index
    %302 = vector.load %arg9[%c0_79, %c0_80] : memref<1x128xf32, #tpu.memory_space<vmem>>, vector<1x128xf32>
    %303 = vector.broadcast %302 : vector<1x128xf32> to vector<64x128xf32>
    %304 = arith.addf %301, %303 : vector<64x128xf32>
    %305 = vector.shape_cast %304 : vector<64x128xf32> to vector<8x8x128xf32>
    %c0_81 = arith.constant 0 : index
    %c0_82 = arith.constant 0 : index
    %c0_83 = arith.constant 0 : index
    %306 = vector.load %arg10[%c0_81, %c0_82, %c0_83] : memref<8x8x128xf32, #tpu.memory_space<vmem>>, vector<8x8x128xf32>
    tpu.vector_store %arg10[%c0_81, %c0_82, %c0_83], %305 {strides = array<i32>} : memref<8x8x128xf32, #tpu.memory_space<vmem>>, vector<8x8x128xf32>,
    return
  }
  func.func @transform_0(%arg0: i32, %arg1: i32, %arg2: memref<1xi32, #tpu.memory_space<smem>>) -> (i32, i32, i32) {
    %c0_i32 = arith.constant 0 : i32
    %c0_i32_0 = arith.constant 0 : i32
    return %arg1, %arg0, %c0_i32 : i32, i32, i32
  }
  func.func @transform_1(%arg0: i32, %arg1: i32, %arg2: memref<1xi32, #tpu.memory_space<smem>>) -> (i32, i32) {
    %c0_i32 = arith.constant 0 : i32
    %c0_i32_0 = arith.constant 0 : i32
    %c0_i32_1 = arith.constant 0 : i32
    return %c0_i32, %c0_i32_0 : i32, i32
  }
  func.func @transform_2(%arg0: i32, %arg1: i32, %arg2: memref<1xi32, #tpu.memory_space<smem>>) -> (i32, i32) {
    %c0_i32 = arith.constant 0 : i32
    %c0_i32_0 = arith.constant 0 : i32
    %c0_i32_1 = arith.constant 0 : i32
    return %c0_i32, %c0_i32_0 : i32, i32
  }
  func.func @transform_3(%arg0: i32, %arg1: i32, %arg2: memref<1xi32, #tpu.memory_space<smem>>) -> (i32, i32) {
    %c0_i32 = arith.constant 0 : i32
    %c0_i32_0 = arith.constant 0 : i32
    %c0_i32_1 = arith.constant 0 : i32
    return %c0_i32, %c0_i32_0 : i32, i32
  }
  func.func @transform_4(%arg0: i32, %arg1: i32, %arg2: memref<1xi32, #tpu.memory_space<smem>>) -> (i32, i32) {
    %c0_i32 = arith.constant 0 : i32
    %c0_i32_0 = arith.constant 0 : i32
    %c0_i32_1 = arith.constant 0 : i32
    return %c0_i32, %c0_i32_0 : i32, i32
  }
  func.func @transform_5(%arg0: i32, %arg1: i32, %arg2: memref<1xi32, #tpu.memory_space<smem>>) -> (i32, i32) {
    %c0_i32 = arith.constant 0 : i32
    %c0_i32_0 = arith.constant 0 : i32
    %c0_i32_1 = arith.constant 0 : i32
    return %c0_i32, %c0_i32_0 : i32, i32
  }
  func.func @transform_6(%arg0: i32, %arg1: i32, %arg2: memref<1xi32, #tpu.memory_space<smem>>) -> (i32, i32) {
    %c0_i32 = arith.constant 0 : i32
    %c0_i32_0 = arith.constant 0 : i32
    %c0_i32_1 = arith.constant 0 : i32
    return %c0_i32, %c0_i32_0 : i32, i32
  }
  func.func @transform_7(%arg0: i32, %arg1: i32, %arg2: memref<1xi32, #tpu.memory_space<smem>>) -> (i32, i32, i32) {
    %c0_i32 = arith.constant 0 : i32
    %c0_i32_0 = arith.constant 0 : i32
    return %arg1, %arg0, %c0_i32 : i32, i32, i32
  }
}

</mosaic_0001>

<bundles_post_ra>
// kernel: tpu_custom_call.1
= control target key start
LH: loop header
LB: loop body
LE: loop exit
PB: predicated region body
PF: predicated region fallthrough
CT: control target
= control target key end

     0   :  { %14 = vsyncpa [#allocation8], 0  ;;  %s2831_s0 = inlined_call_operand.<no memory space> [shape: s32[1], index: 0, kind: input, shape index: {}]   ;;  %s2832_s1 = inlined_call_operand.hbm [shape: f32[8,8,16], index: 1, kind: input, shape index: {}]   ;;  %s2833_s2 = inlined_call_operand.hbm [shape: bf16[16,384], index: 2, kind: input, shape index: {}]   ;;  %s2834_s3 = inlined_call_operand.hbm [shape: bf16[128,384], index: 3, kind: input, shape index: {}]   ;;  %s2835_s4 = inlined_call_operand.vmem [shape: f32[1,384], index: 4, kind: input, shape index: {}]   ;;  %s2836_s5 = inlined_call_operand.vmem [shape: f32[1,384], index: 5, kind: input, shape index: {}]   ;;  %s2837_s6 = inlined_call_operand.hbm [shape: bf16[128,128], index: 6, kind: input, shape index: {}]   ;;  %s2838_s7 = inlined_call_operand.vmem [shape: f32[1,128], index: 7, kind: input, shape index: {}]   ;;  %s2839_s8 = inlined_call_operand.hbm [shape: f32[8,8,128], index: 8, kind: output, shape index: {}]  }
   0x1   :  { %15 = vsyncpa [#allocation11], 0 }
   0x2   :  { %16 = vsyncpa [#allocation14], 0 }
   0x3   :  { %17 = vsyncpa [#allocation9], 0  ;;  %s2178_s26 = smov [#allocation10]   ;;  %s2060_s30 = scalar_lea.hbm %s2833_s2, 384 }
   0x4   :  { %s35_s27 = sshll.u32 %s2178_s26, 4  ;;  %p2061_p0 = scmp.ne.s32.totalorder %s2833_s2, %s2060_s30  ;;  %s36_s27 = int_to_ptr.vmem [resolvable:$true] %s35_s27 }
   0x5   :  { %p2064_p1 = scmp.lt.u32.totalorder %s2060_s30, %s2833_s2 }
   0x7   :  { %p2066_p2 = pnand %p2064_p1, %p2061_p0 }
   0x9   :  { %2069 = shalt.err (!%p2066_p2)
}
   0xa   :  { %s2070_s13 = scalar_lea.vmem %s36_s27, 384  ;;  %p2075_p4 = scmp.lt.s32.totalorder %s36_s27, %s36_s27 }
   0xb   :  { %p2071_p3 = scmp.ne.s32.totalorder %s36_s27, %s2070_s13  ;;  %p2076_p5 = scmp.lt.s32.totalorder %s2070_s13, %s2070_s13 }
   0xd   :  { %p2077_p6 = por %p2076_p5, %p2075_p4 }
   0xf   :  { %p2078_p7 = pnand %p2077_p6, %p2071_p3 }
  0x11   :  { %2081 = shalt.err (!%p2078_p7)
}
  0x12   :  { %s2179_s14 = smov 192   ;;  %s2180_s15 = smov 12  }
  0x13   :  { %41 = dma.hbm_to_vmem [thread:$0]  %s2833_s2, 384, %s36_s27, [#allocation11], %s2179_s14, %s2179_s14, %s2180_s15  }
  0x14   :  { %s2181_s18 = smov [#allocation7]   ;;  %s2082_s22 = scalar_lea.hbm %s2832_s1, 1024 }
  0x15   :  { %s23_s19 = sshll.u32 %s2181_s18, 4  ;;  %p2083_p8 = scmp.ne.s32.totalorder %s2832_s1, %s2082_s22  ;;  %s24_s19 = int_to_ptr.vmem [resolvable:$true] %s23_s19 }
  0x16   :  { %p2086_p9 = scmp.lt.u32.totalorder %s2082_s22, %s2832_s1 }
  0x18   :  { %p2088_p10 = pnand %p2086_p9, %p2083_p8 }
  0x1a   :  { %2091 = shalt.err (!%p2088_p10)
}
  0x1b   :  { %s2092_s26 = scalar_lea.vmem %s24_s19, 1024  ;;  %p2097_p12 = scmp.lt.s32.totalorder %s24_s19, %s24_s19 }
  0x1c   :  { %p2093_p11 = scmp.ne.s32.totalorder %s24_s19, %s2092_s26  ;;  %p2098_p13 = scmp.lt.s32.totalorder %s2092_s26, %s2092_s26 }
  0x1e   :  { %p2099_p0 = por %p2098_p13, %p2097_p12 }
  0x20   :  { %p2100_p1 = pnand %p2099_p0, %p2093_p11 }
  0x22   :  { %2103 = shalt.err (!%p2100_p1)
}
  0x23   :  { %s2182_s2 = smov 128   ;;  %s2183_s27 = smov 8  }
  0x24   :  { %29 = dma.hbm_to_vmem [thread:$0]  %s2832_s1, 1024, %s24_s19, [#allocation8], %s2182_s2, %s2182_s2, %s2183_s27  }
  0x25   :  { %s2184_s30 = smov [#allocation12]   ;;  %s2185_s10 = smov [#allocation13]  }
  0x26   :  { %s47_s9 = sshll.u32 %s2184_s30, 4  ;;  %s63_s11 = sshll.u32 %s2185_s10, 4  ;;  %s48_s9 = int_to_ptr.vmem [resolvable:$true] %s47_s9  ;;  %s2268_s11 = int_to_ptr.vmem [resolvable:$true] %s63_s11 }
  0x27   :  { %s2104_s16 = scalar_lea.hbm %s2834_s3, 3072 }
  0x28   :  { %p2105_p2 = scmp.ne.s32.totalorder %s2834_s3, %s2104_s16  ;;  %p2108_p3 = scmp.lt.u32.totalorder %s2104_s16, %s2834_s3 }
  0x2a   :  { %p2110_p4 = pnand %p2108_p3, %p2105_p2 }
  0x2c   :  { %2113 = shalt.err (!%p2110_p4)
}
  0x2d   :  { %s2114_s1 = scalar_lea.vmem %s48_s9, 3072  ;;  %p2119_p6 = scmp.lt.s32.totalorder %s48_s9, %s48_s9 }
  0x2e   :  { %p2115_p5 = scmp.ne.s32.totalorder %s48_s9, %s2114_s1  ;;  %p2120_p7 = scmp.lt.s32.totalorder %s2114_s1, %s2114_s1 }
  0x30   :  { %p2121_p8 = por %p2120_p7, %p2119_p6 }
  0x32   :  { %p2122_p9 = pnand %p2121_p8, %p2115_p5 }
  0x34   :  { %2125 = shalt.err (!%p2122_p9)
}
  0x35   :  { %53 = dma.hbm_to_vmem [thread:$0]  %s2834_s3, 3072, %s48_s9, [#allocation11], %s2179_s14, %s2179_s14, %s2180_s15  }
  0x36   :  { %s2126_s24 = scalar_lea.hbm %s2837_s6, 1024 }
  0x37   :  { %p2127_p10 = scmp.ne.s32.totalorder %s2837_s6, %s2126_s24  ;;  %p2130_p11 = scmp.lt.u32.totalorder %s2126_s24, %s2837_s6 }
  0x39   :  { %p2132_p12 = pnand %p2130_p11, %p2127_p10 }
  0x3b   :  { %2135 = shalt.err (!%p2132_p12)
}
  0x3c   :  { %s2136_s30 = scalar_lea.vmem %s2268_s11, 1024  ;;  %p2141_p0 = scmp.lt.s32.totalorder %s2268_s11, %s2268_s11 }
  0x3d   :  { %p2137_p13 = scmp.ne.s32.totalorder %s2268_s11, %s2136_s30  ;;  %p2142_p1 = scmp.lt.s32.totalorder %s2136_s30, %s2136_s30 }
  0x3f   :  { %p2143_p2 = por %p2142_p1, %p2141_p0 }
  0x41   :  { %p2144_p3 = pnand %p2143_p2, %p2137_p13 }
  0x43   :  { %2147 = shalt.err (!%p2144_p3)
}
  0x44   :  { %s2186_s3 = smov 64   ;;  %s2187_s14 = smov 4  }
  0x45   :  { %69 = dma.hbm_to_vmem [thread:$0]  %s2837_s6, 1024, %s2268_s11, [#allocation14], %s2186_s3, %s2186_s3, %s2187_s14  }
  0x46   :  { %2170 = dma.done.wait [#allocation8], 1024  }
  0x47   :  { %2171 = vsyncadd [#allocation8], 4294966272 }
  0x48   :  { %2172 = dma.done.wait [#allocation11], 3456  }
  0x49   :  { %2173 = vsyncadd [#allocation11], 4294963840 }
  0x4a   :  { %2174 = dma.done.wait [#allocation14], 1024  }
  0x4b   :  { %2175 = vsyncadd [#allocation14], 4294966272  ;;  %v2840_v0 = vmov 0   ;;  %v1920_v1 = vld [vmem:[#allocation10 + $0x8] ss:$12 sps:$4 sm:$0xff]   ;;  %v90_v2 = vld [vmem:[#allocation7] sm:$0xff]  ;;  %v108_v42 = vlaneseq }
  0x4c   :  { %184 = vmatprep.mubr.bf16.mxu0 %v2840_v0  ;;  %v91_v3 = vld [vmem:[#allocation7 + $0x8] sm:$0xff]  ;;  %vm139_vm0 = vcmask 130048   ;;  %v92_v4 = vld [vmem:[#allocation7 + $0x10] sm:$0xff]  ;;  %1711 = vmatprep.subr.bf16.mxu1 %v1920_v1  ;;  %v93_v6 = vld [vmem:[#allocation7 + $0x18] sm:$0xff]  ;;  %v2842_v33 = vmov 0.0   ;;  %v2190_v34 = vmov 0.0|0.0  }
  0x4d   :  { %v98_v5 = vpack.c.bf16 %v91_v3, %v90_v2  ;;  %1712 = vmatpush3.bf16.msra.mxu1 %v1920_v1  ;;  %v99_v7 = vpack.c.bf16 %v93_v6, %v92_v4  ;;  %v2303_v8 = vld [vmem:[#allocation12 + $0x4] ss:$12 sps:$4 sm:$0xff]   ;;  %v2305_v9 = vld [vmem:[#allocation12] ss:$12 sps:$4 sm:$0xff]   ;;  %v2308_v10 = vld [vmem:[#allocation12 + $0x1c] ss:$12 sps:$4 sm:$0xff]  }
  0x4e   :  { %499 = vmatprep.subr.bf16.mxu1 %v2303_v8  ;;  %v2313_v11 = vld [vmem:[#allocation12 + $0x18] ss:$12 sps:$4 sm:$0xff]   ;;  %v2316_v12 = vld [vmem:[#allocation12 + $0x34] ss:$12 sps:$4 sm:$0xff]   ;;  %v2318_v13 = vld [vmem:[#allocation12 + $0x30] ss:$12 sps:$4 sm:$0xff]  }
  0x4f   :  { %1713 = vmatprep.mubr.msk.bf16.mxu1 %vm139_vm0, %v98_v5  ;;  %v94_v14 = vld [vmem:[#allocation7 + $0x20] sm:$0xff]  ;;  %v95_v15 = vld [vmem:[#allocation7 + $0x28] sm:$0xff]  ;;  %v96_v17 = vld [vmem:[#allocation7 + $0x30] sm:$0xff]  ;;  %vm2191_vm1 = vmmov 0   ;;  %v2434_v43 = vshrl.u32 %v108_v42, 7 }
  0x50   :  { %1714 = vmatmul.mubr.msk.bf16.vlgmr.msra.gmra.mrb[0].mxu1 %vm139_vm0, %v99_v7  ;;  %v100_v16 = vpack.c.bf16 %v95_v15, %v94_v14  ;;  %v97_v18 = vld [vmem:[#allocation7 + $0x38] sm:$0xff]  ;;  %v2322_v19 = vld [vmem:[#allocation12 + $0x4c] ss:$12 sps:$4 sm:$0xff]   ;;  %v2327_v22 = vld [vmem:[#allocation12 + $0x48] ss:$12 sps:$4 sm:$0xff]  }
  0x51   :  { %500 = vmatpush1.bf16.msra.mxu1 %v2305_v9  ;;  %v101_v20 = vpack.c.bf16 %v97_v18, %v96_v17  ;;  %v1942_v21 = vld [vmem:[#allocation10 + $0x4] ss:$12 sps:$4 sm:$0xff]   ;;  %v1946_v23 = vld [vmem:[#allocation10] ss:$12 sps:$4 sm:$0xff]   ;;  %v2330_v24 = vld [vmem:[#allocation12 + $0x64] ss:$12 sps:$4 sm:$0xff]  }
  0x52   :  { %501 = vmatprep.subr.bf16.mxu1 %v2308_v10  ;;  %1717 = vmatprep.mubr.msk.bf16.mxu1 %vm139_vm0, %v100_v16  ;;  %v2335_v25 = vld [vmem:[#allocation12 + $0x60] ss:$12 sps:$4 sm:$0xff]   ;;  %v2338_v26 = vld [vmem:[#allocation12 + $0x7c] ss:$12 sps:$4 sm:$0xff]   ;;  %v2345_v27 = vld [vmem:[#allocation12 + $0x78] ss:$12 sps:$4 sm:$0xff]  }
  0x53   :  { %152 = vmatprep.subr.bf16.mxu0 %v1942_v21  ;;  %v2347_v28 = vld [vmem:[#allocation12 + $0x94] ss:$12 sps:$4 sm:$0xff]   ;;  %v2350_v29 = vld [vmem:[#allocation12 + $0x90] ss:$12 sps:$4 sm:$0xff]   ;;  %v2353_v30 = vld [vmem:[#allocation12 + $0xac] ss:$12 sps:$4 sm:$0xff]  }
  0x54   :  { %153 = vmatpush1.bf16.msra.mxu0 %v1946_v23  ;;  %v2363_v31 = vld [vmem:[#allocation12 + $0xa8] ss:$12 sps:$4 sm:$0xff]   ;;  %v2377_v35 = vld [vmem:[#allocation12 + $0x20] ss:$12 sps:$4 sm:$0xff]   ;;  %v2385_v36 = vld [vmem:[#allocation12 + $0x38] ss:$12 sps:$4 sm:$0xff]  }
  0x55   :  { %502 = vmatpush1.bf16.msra.mxu1 %v2313_v11  ;;  %609 = vmatprep.subr.bf16.mxu0 %v2303_v8  ;;  %v2369_v32 = vld [vmem:[#allocation12 + $0x8] ss:$12 sps:$4 sm:$0xff]   ;;  %v2393_v37 = vld [vmem:[#allocation12 + $0x50] ss:$12 sps:$4 sm:$0xff]   ;;  %v2403_v39 = vld [vmem:[#allocation12 + $0x80] ss:$12 sps:$4 sm:$0xff]  }
  0x56   :  { %503 = vmatprep.subr.bf16.mxu1 %v2316_v12  ;;  %v2399_v38 = vld [vmem:[#allocation12 + $0x68] ss:$12 sps:$4 sm:$0xff]   ;;  %v2407_v40 = vld [vmem:[#allocation12 + $0x98] ss:$12 sps:$4 sm:$0xff]   ;;  %v2411_v41 = vld [vmem:[#allocation12 + $0xb0] ss:$12 sps:$4 sm:$0xff]  }
  0x57   :  { %1565 = vmatmul.mubr.msk.bf16.vlgmr.msra.gmra.mrb[0].mxu0 %vm139_vm0, %v98_v5  ;;  %v2844_v44 = vsub.s32 2, %v2434_v43  ;;  %v106_v45 = vld [vmem:[%s2835_s4] sm:$0x7]  ;;  %v110_v61 = vsub.s32 0, %v2434_v43  ;;  %v114_v63 = vsub.s32 1, %v2434_v43 }
  0x58   :  { %1718 = vmatmul.mubr.msk.bf16.gmra.mrb[4].mxu1 %vm139_vm0, %v101_v20  ;;  %610 = vmatpush1.bf16.msra.mxu0 %v2305_v9 }
  0x59   :  { %504 = vmatpush1.bf16.msra.mxu1 %v2318_v13  ;;  %531 = vmatprep.mubr.bf16.mxu1 %v2840_v0  ;;  %v2442_v46 = vrot.slane %v106_v45, %v2844_v44  ;;  %v111_v2 = vrot.slane %v106_v45, %v110_v61  ;;  %v115_v4 = vrot.slane %v106_v45, %v114_v63 }
  0x5a   :  { %505 = vmatprep.subr.bf16.mxu1 %v2322_v19  ;;  %194 = vmatprep.mubr.bf16.mxu0 %v2840_v0 }
  0x5b   :  { %611 = vmatprep.subr.bf16.mxu0 %v2308_v10 }
  0x5c   :  { %612 = vmatpush1.bf16.msra.mxu0 %v2313_v11 }
  0x5d   :  { %506 = vmatpush1.bf16.msra.mxu1 %v2327_v22  ;;  %613 = vmatprep.subr.bf16.mxu0 %v2316_v12 }
  0x5e   :  { %507 = vmatprep.subr.bf16.mxu1 %v2330_v24 }
  0x5f   :  { %1566 = vmatmul.mubr.msk.bf16.gmra.mrb[4].mxu0 %vm139_vm0, %v99_v7 }
  0x60   :  { %614 = vmatpush1.bf16.msra.mxu0 %v2318_v13  ;;  %204 = vmatprep.mubr.bf16.mxu0 %v2840_v0 }
  0x61   :  { %508 = vmatpush1.bf16.msra.mxu1 %v2335_v25  ;;  %615 = vmatprep.subr.bf16.mxu0 %v2322_v19 }
  0x62   :  { %509 = vmatprep.subr.bf16.mxu1 %v2338_v26 }
  0x64   :  { %616 = vmatpush1.bf16.msra.mxu0 %v2327_v22 }
  0x65   :  { %510 = vmatpush1.bf16.msra.mxu1 %v2345_v27  ;;  %617 = vmatprep.subr.bf16.mxu0 %v2330_v24 }
  0x66   :  { %511 = vmatprep.subr.bf16.mxu1 %v2347_v28 }
  0x67   :  { %1567 = vmatmul.mubr.msk.bf16.gmra.mrb[8].mxu0 %vm139_vm0, %v100_v16 }
  0x68   :  { %618 = vmatpush1.bf16.msra.mxu0 %v2335_v25  ;;  %214 = vmatprep.mubr.bf16.mxu0 %v2840_v0 }
  0x69   :  { %512 = vmatpush1.bf16.msra.mxu1 %v2350_v29  ;;  %619 = vmatprep.subr.bf16.mxu0 %v2338_v26 }
  0x6a   :  { %513 = vmatprep.subr.bf16.mxu1 %v2353_v30 }
  0x6c   :  { %620 = vmatpush1.bf16.msra.mxu0 %v2345_v27 }
  0x6d   :  { %514 = vmatpush1.bf16.msra.mxu1 %v2363_v31  ;;  %621 = vmatprep.subr.bf16.mxu0 %v2347_v28 }
  0x6e   :  { %1721 = vmatprep.subr.bf16.mxu1 %v2842_v33 }
  0x6f   :  { %1568 = vmatmul.mubr.msk.bf16.gmra.mrb[12].mxu0 %vm139_vm0, %v101_v20 }
  0x70   :  { %532 = vmatmul.mubr.bf16.vlgmr.msra.gmra.mrb[8].mxu1 %v2190_v34  ;;  %622 = vmatpush1.bf16.msra.mxu0 %v2350_v29 }
  0x71   :  { %1722 = vmatpush3.bf16.msra.mxu1 %v2369_v32  ;;  %1737 = vmatprep.mubr.msk.bf16.mxu1 %vm2191_vm1, %v2842_v33 }
  0x72   :  { %1723 = vmatprep.subr.bf16.mxu1 %v2842_v33  ;;  %641 = vmatprep.mubr.bf16.mxu0 %v2840_v0 }
  0x73   :  { %623 = vmatprep.subr.bf16.mxu0 %v2353_v30 }
  0x74   :  { %624 = vmatpush1.bf16.msra.mxu0 %v2363_v31 }
  0x75   :  { %1724 = vmatpush3.bf16.msra.mxu1 %v2377_v35  ;;  %720 = vmatprep.subr.bf16.mxu0 %v2303_v8 }
  0x76   :  { %1725 = vmatprep.subr.bf16.mxu1 %v2842_v33 }
  0x79   :  { %1726 = vmatpush3.bf16.msra.mxu1 %v2385_v36 }
  0x7a   :  { %1727 = vmatprep.subr.bf16.mxu1 %v2842_v33 }
  0x7d   :  { %1728 = vmatpush3.bf16.msra.mxu1 %v2393_v37 }
  0x7e   :  { %1729 = vmatprep.subr.bf16.mxu1 %v2842_v33 }
  0x81   :  { %1730 = vmatpush3.bf16.msra.mxu1 %v2399_v38 }
  0x82   :  { %1731 = vmatprep.subr.bf16.mxu1 %v2842_v33 }
  0x85   :  { %1732 = vmatpush3.bf16.msra.mxu1 %v2403_v39 }
  0x86   :  { %1733 = vmatprep.subr.bf16.mxu1 %v2842_v33 }
  0x89   :  { %1734 = vmatpush3.bf16.msra.mxu1 %v2407_v40 }
  0x8a   :  { %1735 = vmatprep.subr.bf16.mxu1 %v2842_v33 }
  0x8d   :  { %1736 = vmatpush3.bf16.msra.mxu1 %v2411_v41 }
  0x8e   :  { %1741 = vmatprep.subr.bf16.mxu1 %v2842_v33 }
  0x90   :  { %1738 = vmatmul.mubr.bf16.vlgmr.msra.gmra.mrb[12].mxu1 %v2190_v34  ;;  %v346_v34 = vld [vmem:[%s2836_s5] sm:$0x7] }
  0x91   :  { %1742 = vmatpush3.bf16.msra.mxu1 %v2369_v32  ;;  %1757 = vmatprep.mubr.msk.bf16.mxu1 %vm2191_vm1, %v2842_v33  ;;  %v2484_v45 = vrot.slane %v346_v34, %v110_v61 }
  0x92   :  { %1743 = vmatprep.subr.bf16.mxu1 %v2842_v33 }
  0x95   :  { %1744 = vmatpush3.bf16.msra.mxu1 %v2377_v35 }
  0x96   :  { %1745 = vmatprep.subr.bf16.mxu1 %v2842_v33 }
  0x99   :  { %1746 = vmatpush3.bf16.msra.mxu1 %v2385_v36 }
  0x9a   :  { %1747 = vmatprep.subr.bf16.mxu1 %v2842_v33 }
  0x9d   :  { %1748 = vmatpush3.bf16.msra.mxu1 %v2393_v37 }
  0x9e   :  { %1749 = vmatprep.subr.bf16.mxu1 %v2842_v33 }
  0xa1   :  { %1750 = vmatpush3.bf16.msra.mxu1 %v2399_v38 }
  0xa2   :  { %1751 = vmatprep.subr.bf16.mxu1 %v2842_v33 }
  0xa5   :  { %1752 = vmatpush3.bf16.msra.mxu1 %v2403_v39 }
  0xa6   :  { %1753 = vmatprep.subr.bf16.mxu1 %v2842_v33 }
  0xa9   :  { %1754 = vmatpush3.bf16.msra.mxu1 %v2407_v40 }
  0xaa   :  { %1755 = vmatprep.subr.bf16.mxu1 %v2842_v33 }
  0xad   :  { %1756 = vmatpush3.bf16.msra.mxu1 %v2411_v41 }
  0xae   :  { %1761 = vmatprep.subr.bf16.mxu1 %v2842_v33 }
 0x123   :  { %v1715_v47 = vpop.f32.mrb[0].mxu1 }
 0x124   :  { %v2445_v48 = vadd.f32 %v1715_v47, %v2442_v46  ;;  %v2447_v49 = vpop.f32.mrb[1].mxu1  ;;  %v2486_v47 = vrot.slane %v346_v34, %v114_v63 }
 0x125   :  { %v1716_v50 = vpop.f32.mrb[2].mxu1 }
 0x126   :  { %v2450_v51 = vadd.f32 %v1716_v50, %v2442_v46  ;;  %v262_v52 = vpop.f32.mrb[3].mxu1 }
 0x127   :  { %v2453_v53 = vadd.f32 %v262_v52, %v2442_v46 }
 0x12a   :  { %v186_v1 = vpop.f32.mrb[0].mxu0 }
 0x12b   :  { %v1719_v54 = vpop.f32.mrb[4].mxu1  ;;  %v188_v3 = vpop.f32.mrb[1].mxu0  ;;  %v187_v52 = vadd.f32 %v186_v1, %v111_v2 }
 0x12c   :  { %v2456_v55 = vadd.f32 %v1719_v54, %v2442_v46  ;;  %v275_v56 = vpop.f32.mrb[5].mxu1  ;;  %v190_v5 = vpop.f32.mrb[2].mxu0 }
 0x12d   :  { %v2459_v57 = vadd.f32 %v275_v56, %v2442_v46  ;;  %v1720_v58 = vpop.f32.mrb[6].mxu1  ;;  %v2469_v6 = vadd.f32 %v190_v5, %v111_v2  ;;  %v192_v7 = vpop.f32.mrb[3].mxu0 }
 0x12e   :  { %2845 = vst [vmem:[#allocation20_spill] sm:$0xff] %v2456_v55  ;;  %v2462_v59 = vadd.f32 %v1720_v58, %v2442_v46  ;;  %v278_v60 = vpop.f32.mrb[7].mxu1  ;;  %v2471_v14 = vadd.f32 %v192_v7, %v115_v4 }
 0x12f   :  { %v2466_v62 = vadd.f32 %v278_v60, %v2442_v46  ;;  %v189_v60 = vadd.f32 %v188_v3, %v115_v4 }
 0x130   :  { %2846 = vst [vmem:[#allocation21_spill] sm:$0xff] %v2462_v59 }
 0x131   :  { %2847 = vst [vmem:[#allocation22_spill] sm:$0xff] %v2466_v62 }
 0x132   :  { %v196_v15 = vpop.f32.mrb[4].mxu0 }
 0x133   :  { %v2473_v16 = vadd.f32 %v196_v15, %v111_v2  ;;  %v198_v17 = vpop.f32.mrb[5].mxu0 }
 0x134   :  { %v2475_v18 = vadd.f32 %v198_v17, %v115_v4  ;;  %v200_v20 = vpop.f32.mrb[6].mxu0 }
 0x135   :  { %v2477_v21 = vadd.f32 %v200_v20, %v111_v2  ;;  %v202_v23 = vpop.f32.mrb[7].mxu0 }
 0x136   :  { %v2482_v42 = vadd.f32 %v202_v23, %v115_v4 }
 0x13a   :  { %v206_v50 = vpop.f32.mrb[8].mxu0 }
 0x13b   :  { %v2488_v54 = vadd.f32 %v206_v50, %v111_v2  ;;  %v208_v56 = vpop.f32.mrb[9].mxu0 }
 0x13c   :  { %v2490_v5 = vadd.f32 %v208_v56, %v115_v4  ;;  %v210_v7 = vpop.f32.mrb[10].mxu0 }
 0x13d   :  { %v2493_v20 = vadd.f32 %v210_v7, %v111_v2  ;;  %v212_v23 = vpop.f32.mrb[11].mxu0 }
 0x13e   :  { %v2496_v0 = vadd.f32 %v212_v23, %v115_v4 }
 0x13f   :  { %2848 = vst [vmem:[#allocation23_spill] sm:$0xff] %v2493_v20 }
 0x142   :  { %v216_v59 = vpop.f32.mrb[12].mxu0 }
 0x143   :  { %v533_v58 = vpop.f32.mrb[8].mxu1  ;;  %v2498_v3 = vadd.f32 %v216_v59, %v111_v2  ;;  %v218_v56 = vpop.f32.mrb[13].mxu0 }
 0x144   :  { %v534_v15 = vadd.f32 %v533_v58, %v2484_v45  ;;  %v535_v17 = vpop.f32.mrb[9].mxu1  ;;  %v2500_v55 = vadd.f32 %v218_v56, %v115_v4  ;;  %v220_v58 = vpop.f32.mrb[14].mxu0 }
 0x145   :  { %v536_v61 = vadd.f32 %v535_v17, %v2486_v47  ;;  %v537_v63 = vpop.f32.mrb[10].mxu1  ;;  %v2502_v7 = vadd.f32 %v220_v58, %v111_v2  ;;  %v222_v62 = vpop.f32.mrb[15].mxu0 }
 0x146   :  { %v580_v1 = vadd.f32 %v534_v15, %v187_v52  ;;  %v538_v50 = vpop.f32.mrb[11].mxu1  ;;  %v2504_v20 = vadd.f32 %v222_v62, %v115_v4  ;;  %v2849_v15 = vsub.s32 2, %v2434_v43  ;;  %v260_v62 = vadd.f32 %v2447_v49, %v2442_v46 }
 0x147   :  { %v587_v33 = vadd.f32 %v536_v61, %v189_v60  ;;  %v2850_v46 = vmov 0.0   ;;  %v2851_v49 = vmov 0  }
 0x148   :  { %v1597_v44 = vmul.f32 -1.442695, %v580_v1 }
 0x149   :  { %v1598_v17 = vmul.f32 -1.442695, %v587_v33 }
 0x14a   :  { %1964 = vpow2.f32 %v1597_v44  ;;  %v2508_v44 = vrot.slane %v346_v34, %v2849_v15 }
 0x14b   :  { %1966 = vpow2.f32 %v1598_v17 }
 0x154   :  { %v1965_v23 = vpop.eup %1964 }
 0x155   :  { %v584_v52 = vadd.f32 1.0, %v1965_v23  ;;  %v1967_v60 = vpop.eup %1966 }
 0x156   :  { %v591_v59 = vadd.f32 1.0, %v1967_v60 }
 0x157   :  { %1968 = vrcp.f32 %v584_v52 }
 0x158   :  { %1970 = vrcp.f32 %v591_v59 }
 0x161   :  { %v1969_v2 = vpop.eup %1968 }
 0x162   :  { %v1971_v58 = vpop.eup %1970 }
 0x163   :  { %v574_v61 = vpop.f32.mrb[12].mxu1  ;;  %v597_v17 = vsub.f32 1.0, %v1971_v58  ;;  %v599_v34 = vmul.f32 0.0, %v1971_v58 }
 0x164   :  { %v575_v63 = vadd.f32 %v574_v61, %v2508_v44  ;;  %v1739_v1 = vpop.f32.mrb[13].mxu1 }
 0x165   :  { %v577_v50 = vpop.f32.mrb[14].mxu1 }
 0x166   :  { %v594_v33 = vmul.f32 %v1969_v2, %v575_v63  ;;  %v1740_v4 = vpop.f32.mrb[15].mxu1 }
 0x168   :  { %v595_v56 = vadd.f32 %v594_v33, %v260_v62 }
 0x16a   :  { %1972 = vtanh.f32 %v595_v56 }
 0x174   :  { %v1973_v43 = vpop.eup %1972 }
 0x175   :  { %v598_v23 = vmul.f32 %v1973_v43, %v597_v17 }
 0x177   :  { %v2513_v52 = vadd.f32 %v599_v34, %v598_v23 }
 0x179   :  { %v608_v60 = vpack.c.bf16 %v2513_v52, %v2513_v52 }
 0x17b   :  { %642 = vmatmul.mubr.bf16.vlgmr.msra.gmra.mrb[16].mxu0 %v608_v60  ;;  %1758 = vmatmul.mubr.bf16.vlgmr.msra.gmra.mrb[16].mxu1 %v608_v60 }
 0x17c   :  { %721 = vmatpush1.bf16.msra.mxu0 %v2305_v9  ;;  %1762 = vmatpush3.bf16.msra.mxu1 %v2369_v32 }
 0x17d   :  { %722 = vmatprep.subr.bf16.mxu0 %v2308_v10  ;;  %1763 = vmatprep.subr.bf16.mxu1 %v2850_v46 }
 0x17e   :  { %752 = vmatprep.mubr.bf16.mxu0 %v2851_v49  ;;  %1777 = vmatprep.mubr.msk.bf16.mxu1 %vm2191_vm1, %v2850_v46 }
 0x180   :  { %723 = vmatpush1.bf16.msra.mxu0 %v2313_v11  ;;  %1764 = vmatpush3.bf16.msra.mxu1 %v2377_v35 }
 0x181   :  { %724 = vmatprep.subr.bf16.mxu0 %v2316_v12  ;;  %1765 = vmatprep.subr.bf16.mxu1 %v2850_v46 }
 0x184   :  { %725 = vmatpush1.bf16.msra.mxu0 %v2318_v13  ;;  %1766 = vmatpush3.bf16.msra.mxu1 %v2385_v36 }
 0x185   :  { %726 = vmatprep.subr.bf16.mxu0 %v2322_v19  ;;  %1767 = vmatprep.subr.bf16.mxu1 %v2850_v46 }
 0x188   :  { %727 = vmatpush1.bf16.msra.mxu0 %v2327_v22  ;;  %1768 = vmatpush3.bf16.msra.mxu1 %v2393_v37 }
 0x189   :  { %728 = vmatprep.subr.bf16.mxu0 %v2330_v24  ;;  %1769 = vmatprep.subr.bf16.mxu1 %v2850_v46 }
 0x18c   :  { %729 = vmatpush1.bf16.msra.mxu0 %v2335_v25  ;;  %1770 = vmatpush3.bf16.msra.mxu1 %v2399_v38 }
 0x18d   :  { %730 = vmatprep.subr.bf16.mxu0 %v2338_v26  ;;  %1771 = vmatprep.subr.bf16.mxu1 %v2850_v46 }
 0x190   :  { %731 = vmatpush1.bf16.msra.mxu0 %v2345_v27  ;;  %1772 = vmatpush3.bf16.msra.mxu1 %v2403_v39 }
 0x191   :  { %732 = vmatprep.subr.bf16.mxu0 %v2347_v28  ;;  %1773 = vmatprep.subr.bf16.mxu1 %v2850_v46 }
 0x194   :  { %733 = vmatpush1.bf16.msra.mxu0 %v2350_v29  ;;  %1774 = vmatpush3.bf16.msra.mxu1 %v2407_v40 }
 0x195   :  { %734 = vmatprep.subr.bf16.mxu0 %v2353_v30  ;;  %1775 = vmatprep.subr.bf16.mxu1 %v2850_v46 }
 0x198   :  { %735 = vmatpush1.bf16.msra.mxu0 %v2363_v31  ;;  %1776 = vmatpush3.bf16.msra.mxu1 %v2411_v41 }
 0x199   :  { %831 = vmatprep.subr.bf16.mxu0 %v2303_v8  ;;  %1781 = vmatprep.subr.bf16.mxu1 %v2850_v46 }
 0x24e   :  { %v643_v15 = vpop.f32.mrb[16].mxu0  ;;  %v684_v59 = vpop.f32.mrb[16].mxu1 }
 0x24f   :  { %v644_v61 = vadd.f32 %v643_v15, %v2484_v45  ;;  %v645_v63 = vpop.f32.mrb[17].mxu0  ;;  %v1759_v1 = vpop.f32.mrb[17].mxu1 }
 0x250   :  { %v646_v2 = vadd.f32 %v645_v63, %v2486_v47  ;;  %v647_v50 = vpop.f32.mrb[18].mxu0  ;;  %v687_v62 = vpop.f32.mrb[18].mxu1  ;;  %v685_v1 = vadd.f32 %v684_v59, %v2508_v44 }
 0x251   :  { %v690_v33 = vadd.f32 %v644_v61, %v2469_v6  ;;  %v648_v4 = vpop.f32.mrb[19].mxu0  ;;  %v1760_v56 = vpop.f32.mrb[19].mxu1 }
 0x252   :  { %v697_v58 = vadd.f32 %v646_v2, %v2471_v14 }
 0x253   :  { %v1599_v17 = vmul.f32 -1.442695, %v690_v33 }
 0x254   :  { %v1600_v43 = vmul.f32 -1.442695, %v697_v58 }
 0x255   :  { %1974 = vpow2.f32 %v1599_v17 }
 0x256   :  { %1976 = vpow2.f32 %v1600_v43 }
 0x25f   :  { %v1975_v34 = vpop.eup %1974 }
 0x260   :  { %v694_v23 = vadd.f32 1.0, %v1975_v34  ;;  %v1977_v60 = vpop.eup %1976 }
 0x261   :  { %v701_v15 = vadd.f32 1.0, %v1977_v60 }
 0x262   :  { %1978 = vrcp.f32 %v694_v23 }
 0x263   :  { %1980 = vrcp.f32 %v701_v15 }
 0x26c   :  { %v1979_v63 = vpop.eup %1978 }
 0x26d   :  { %v704_v50 = vmul.f32 %v1979_v63, %v685_v1  ;;  %v1981_v61 = vpop.eup %1980 }
 0x26e   :  { %v707_v62 = vsub.f32 1.0, %v1981_v61  ;;  %v709_v33 = vmul.f32 %v1981_v61, %v2513_v52 }
 0x26f   :  { %v705_v6 = vadd.f32 %v704_v50, %v2453_v53 }
 0x271   :  { %1982 = vtanh.f32 %v705_v6 }
 0x27b   :  { %v1983_v14 = vpop.eup %1982 }
 0x27c   :  { %v708_v2 = vmul.f32 %v1983_v14, %v707_v62 }
 0x27e   :  { %v2559_v4 = vadd.f32 %v709_v33, %v708_v2 }
 0x280   :  { %v719_v56 = vpack.c.bf16 %v2559_v4, %v2559_v4 }
 0x282   :  { %753 = vmatmul.mubr.bf16.vlgmr.msra.gmra.mrb[20].mxu0 %v719_v56  ;;  %1778 = vmatmul.mubr.bf16.vlgmr.msra.gmra.mrb[20].mxu1 %v719_v56 }
 0x283   :  { %832 = vmatpush1.bf16.msra.mxu0 %v2305_v9  ;;  %1782 = vmatpush3.bf16.msra.mxu1 %v2369_v32 }
 0x284   :  { %833 = vmatprep.subr.bf16.mxu0 %v2308_v10  ;;  %1783 = vmatprep.subr.bf16.mxu1 %v2850_v46 }
 0x285   :  { %863 = vmatprep.mubr.bf16.mxu0 %v2851_v49  ;;  %1797 = vmatprep.mubr.msk.bf16.mxu1 %vm2191_vm1, %v2850_v46 }
 0x287   :  { %834 = vmatpush1.bf16.msra.mxu0 %v2313_v11  ;;  %1784 = vmatpush3.bf16.msra.mxu1 %v2377_v35 }
 0x288   :  { %835 = vmatprep.subr.bf16.mxu0 %v2316_v12  ;;  %1785 = vmatprep.subr.bf16.mxu1 %v2850_v46 }
 0x28b   :  { %836 = vmatpush1.bf16.msra.mxu0 %v2318_v13  ;;  %1786 = vmatpush3.bf16.msra.mxu1 %v2385_v36 }
 0x28c   :  { %837 = vmatprep.subr.bf16.mxu0 %v2322_v19  ;;  %1787 = vmatprep.subr.bf16.mxu1 %v2850_v46 }
 0x28f   :  { %838 = vmatpush1.bf16.msra.mxu0 %v2327_v22  ;;  %1788 = vmatpush3.bf16.msra.mxu1 %v2393_v37 }
 0x290   :  { %839 = vmatprep.subr.bf16.mxu0 %v2330_v24  ;;  %1789 = vmatprep.subr.bf16.mxu1 %v2850_v46 }
 0x293   :  { %840 = vmatpush1.bf16.msra.mxu0 %v2335_v25  ;;  %1790 = vmatpush3.bf16.msra.mxu1 %v2399_v38 }
 0x294   :  { %841 = vmatprep.subr.bf16.mxu0 %v2338_v26  ;;  %1791 = vmatprep.subr.bf16.mxu1 %v2850_v46 }
 0x297   :  { %842 = vmatpush1.bf16.msra.mxu0 %v2345_v27  ;;  %1792 = vmatpush3.bf16.msra.mxu1 %v2403_v39 }
 0x298   :  { %843 = vmatprep.subr.bf16.mxu0 %v2347_v28  ;;  %1793 = vmatprep.subr.bf16.mxu1 %v2850_v46 }
 0x29b   :  { %844 = vmatpush1.bf16.msra.mxu0 %v2350_v29  ;;  %1794 = vmatpush3.bf16.msra.mxu1 %v2407_v40 }
 0x29c   :  { %845 = vmatprep.subr.bf16.mxu0 %v2353_v30  ;;  %1795 = vmatprep.subr.bf16.mxu1 %v2850_v46 }
 0x29f   :  { %846 = vmatpush1.bf16.msra.mxu0 %v2363_v31  ;;  %1796 = vmatpush3.bf16.msra.mxu1 %v2411_v41 }
 0x2a0   :  { %942 = vmatprep.subr.bf16.mxu0 %v2303_v8  ;;  %1801 = vmatprep.subr.bf16.mxu1 %v2850_v46 }
 0x355   :  { %v754_v53 = vpop.f32.mrb[20].mxu0  ;;  %v795_v59 = vpop.f32.mrb[20].mxu1 }
 0x356   :  { %v755_v58 = vadd.f32 %v754_v53, %v2484_v45  ;;  %v756_v17 = vpop.f32.mrb[21].mxu0  ;;  %v1779_v43 = vpop.f32.mrb[21].mxu1  ;;  %v796_v56 = vadd.f32 %v795_v59, %v2508_v44 }
 0x357   :  { %v757_v34 = vadd.f32 %v756_v17, %v2486_v47  ;;  %v758_v23 = vpop.f32.mrb[22].mxu0  ;;  %v798_v60 = vpop.f32.mrb[22].mxu1 }
 0x358   :  { %v801_v15 = vadd.f32 %v755_v58, %v2473_v16  ;;  %v759_v1 = vpop.f32.mrb[23].mxu0  ;;  %v1780_v63 = vpop.f32.mrb[23].mxu1 }
 0x359   :  { %v808_v50 = vadd.f32 %v757_v34, %v2475_v18 }
 0x35a   :  { %v1601_v6 = vmul.f32 -1.442695, %v801_v15 }
 0x35b   :  { %v1602_v61 = vmul.f32 -1.442695, %v808_v50 }
 0x35c   :  { %1984 = vpow2.f32 %v1601_v6 }
 0x35d   :  { %1986 = vpow2.f32 %v1602_v61 }
 0x366   :  { %v1985_v62 = vpop.eup %1984 }
 0x367   :  { %v805_v14 = vadd.f32 1.0, %v1985_v62  ;;  %v1987_v2 = vpop.eup %1986 }
 0x368   :  { %v812_v33 = vadd.f32 1.0, %v1987_v2 }
 0x369   :  { %1988 = vrcp.f32 %v805_v14 }
 0x36a   :  { %1990 = vrcp.f32 %v812_v33 }
 0x373   :  { %v1989_v53 = vpop.eup %1988 }
 0x374   :  { %v815_v17 = vmul.f32 %v1989_v53, %v796_v56  ;;  %v1991_v58 = vpop.eup %1990 }
 0x375   :  { %v818_v43 = vsub.f32 1.0, %v1991_v58  ;;  %v820_v23 = vmul.f32 %v1991_v58, %v2559_v4 }
 0x376   :  { %v816_v16 = vadd.f32 %v815_v17, %v2445_v48 }
 0x378   :  { %1992 = vtanh.f32 %v816_v16 }
 0x382   :  { %v1993_v18 = vpop.eup %1992 }
 0x383   :  { %v819_v34 = vmul.f32 %v1993_v18, %v818_v43 }
 0x385   :  { %v2605_v60 = vadd.f32 %v820_v23, %v819_v34 }
 0x387   :  { %v830_v15 = vpack.c.bf16 %v2605_v60, %v2605_v60 }
 0x389   :  { %864 = vmatmul.mubr.bf16.vlgmr.msra.gmra.mrb[24].mxu0 %v830_v15  ;;  %1798 = vmatmul.mubr.bf16.vlgmr.msra.gmra.mrb[24].mxu1 %v830_v15 }
 0x38a   :  { %943 = vmatpush1.bf16.msra.mxu0 %v2305_v9  ;;  %1802 = vmatpush3.bf16.msra.mxu1 %v2369_v32 }
 0x38b   :  { %944 = vmatprep.subr.bf16.mxu0 %v2308_v10  ;;  %1803 = vmatprep.subr.bf16.mxu1 %v2850_v46 }
 0x38c   :  { %974 = vmatprep.mubr.bf16.mxu0 %v2851_v49  ;;  %1817 = vmatprep.mubr.msk.bf16.mxu1 %vm2191_vm1, %v2850_v46 }
 0x38e   :  { %945 = vmatpush1.bf16.msra.mxu0 %v2313_v11  ;;  %1804 = vmatpush3.bf16.msra.mxu1 %v2377_v35 }
 0x38f   :  { %946 = vmatprep.subr.bf16.mxu0 %v2316_v12  ;;  %1805 = vmatprep.subr.bf16.mxu1 %v2850_v46 }
 0x392   :  { %947 = vmatpush1.bf16.msra.mxu0 %v2318_v13  ;;  %1806 = vmatpush3.bf16.msra.mxu1 %v2385_v36 }
 0x393   :  { %948 = vmatprep.subr.bf16.mxu0 %v2322_v19  ;;  %1807 = vmatprep.subr.bf16.mxu1 %v2850_v46 }
 0x396   :  { %949 = vmatpush1.bf16.msra.mxu0 %v2327_v22  ;;  %1808 = vmatpush3.bf16.msra.mxu1 %v2393_v37 }
 0x397   :  { %950 = vmatprep.subr.bf16.mxu0 %v2330_v24  ;;  %1809 = vmatprep.subr.bf16.mxu1 %v2850_v46 }
 0x39a   :  { %951 = vmatpush1.bf16.msra.mxu0 %v2335_v25  ;;  %1810 = vmatpush3.bf16.msra.mxu1 %v2399_v38 }
 0x39b   :  { %952 = vmatprep.subr.bf16.mxu0 %v2338_v26  ;;  %1811 = vmatprep.subr.bf16.mxu1 %v2850_v46 }
 0x39e   :  { %953 = vmatpush1.bf16.msra.mxu0 %v2345_v27  ;;  %1812 = vmatpush3.bf16.msra.mxu1 %v2403_v39 }
 0x39f   :  { %954 = vmatprep.subr.bf16.mxu0 %v2347_v28  ;;  %1813 = vmatprep.subr.bf16.mxu1 %v2850_v46 }
 0x3a2   :  { %955 = vmatpush1.bf16.msra.mxu0 %v2350_v29  ;;  %1814 = vmatpush3.bf16.msra.mxu1 %v2407_v40 }
 0x3a3   :  { %956 = vmatprep.subr.bf16.mxu0 %v2353_v30  ;;  %1815 = vmatprep.subr.bf16.mxu1 %v2850_v46 }
 0x3a6   :  { %957 = vmatpush1.bf16.msra.mxu0 %v2363_v31  ;;  %1816 = vmatpush3.bf16.msra.mxu1 %v2411_v41 }
 0x3a7   :  { %1053 = vmatprep.subr.bf16.mxu0 %v2303_v8  ;;  %1821 = vmatprep.subr.bf16.mxu1 %v2850_v46 }
 0x45c   :  { %v865_v48 = vpop.f32.mrb[24].mxu0  ;;  %v906_v59 = vpop.f32.mrb[24].mxu1 }
 0x45d   :  { %v866_v1 = vadd.f32 %v865_v48, %v2484_v45  ;;  %v867_v63 = vpop.f32.mrb[25].mxu0  ;;  %v1799_v50 = vpop.f32.mrb[25].mxu1  ;;  %v907_v34 = vadd.f32 %v906_v59, %v2508_v44 }
 0x45e   :  { %v868_v6 = vadd.f32 %v867_v63, %v2486_v47  ;;  %v869_v61 = vpop.f32.mrb[26].mxu0  ;;  %v909_v62 = vpop.f32.mrb[26].mxu1 }
 0x45f   :  { %v912_v14 = vadd.f32 %v866_v1, %v2477_v21  ;;  %v870_v2 = vpop.f32.mrb[27].mxu0  ;;  %v1800_v33 = vpop.f32.mrb[27].mxu1 }
 0x460   :  { %v919_v56 = vadd.f32 %v868_v6, %v2482_v42 }
 0x461   :  { %v1603_v53 = vmul.f32 -1.442695, %v912_v14 }
 0x462   :  { %v1604_v17 = vmul.f32 -1.442695, %v919_v56 }
 0x463   :  { %1994 = vpow2.f32 %v1603_v53 }
 0x464   :  { %1996 = vpow2.f32 %v1604_v17 }
 0x46d   :  { %v1995_v16 = vpop.eup %1994 }
 0x46e   :  { %v916_v58 = vadd.f32 1.0, %v1995_v16  ;;  %v1997_v43 = vpop.eup %1996 }
 0x46f   :  { %v923_v18 = vadd.f32 1.0, %v1997_v43 }
 0x470   :  { %1998 = vrcp.f32 %v916_v58 }
 0x471   :  { %2000 = vrcp.f32 %v923_v18 }
 0x47a   :  { %v1999_v23 = vpop.eup %1998 }
 0x47b   :  { %v926_v15 = vmul.f32 %v1999_v23, %v907_v34  ;;  %v2001_v48 = vpop.eup %2000 }
 0x47c   :  { %v929_v1 = vsub.f32 1.0, %v2001_v48  ;;  %v931_v50 = vmul.f32 %v2001_v48, %v2605_v60 }
 0x47d   :  { %v927_v21 = vadd.f32 %v926_v15, %v2450_v51 }
 0x47f   :  { %2002 = vtanh.f32 %v927_v21 }
 0x489   :  { %v2003_v42 = vpop.eup %2002 }
 0x48a   :  { %v930_v63 = vmul.f32 %v2003_v42, %v929_v1  ;;  %v2701_v1 = vld [vmem:[#allocation12] ss:$12 sps:$4 sm:$0xff]   ;;  %v2712_v42 = vld [vmem:[#allocation12 + $0x18] ss:$12 sps:$4 sm:$0xff]  }
 0x48c   :  { %v2651_v6 = vadd.f32 %v931_v50, %v930_v63  ;;  %v2716_v63 = vld [vmem:[#allocation12 + $0x34] ss:$12 sps:$4 sm:$0xff]   ;;  %v2720_v50 = vld [vmem:[#allocation12 + $0x30] ss:$12 sps:$4 sm:$0xff]  }
 0x48e   :  { %v941_v61 = vpack.c.bf16 %v2651_v6, %v2651_v6 }
 0x490   :  { %975 = vmatmul.mubr.bf16.vlgmr.msra.gmra.mrb[28].mxu0 %v941_v61  ;;  %1818 = vmatmul.mubr.bf16.vlgmr.msra.gmra.mrb[28].mxu1 %v941_v61  ;;  %v2724_v61 = vld [vmem:[#allocation12 + $0x4c] ss:$12 sps:$4 sm:$0xff]  }
 0x491   :  { %1054 = vmatpush1.bf16.msra.mxu0 %v2305_v9  ;;  %1822 = vmatpush3.bf16.msra.mxu1 %v2369_v32 }
 0x492   :  { %1055 = vmatprep.subr.bf16.mxu0 %v2308_v10  ;;  %1823 = vmatprep.subr.bf16.mxu1 %v2850_v46 }
 0x493   :  { %1085 = vmatprep.mubr.bf16.mxu0 %v2851_v49  ;;  %1837 = vmatprep.mubr.msk.bf16.mxu1 %vm2191_vm1, %v2850_v46 }
 0x495   :  { %1056 = vmatpush1.bf16.msra.mxu0 %v2313_v11  ;;  %1824 = vmatpush3.bf16.msra.mxu1 %v2377_v35 }
 0x496   :  { %1057 = vmatprep.subr.bf16.mxu0 %v2316_v12  ;;  %1825 = vmatprep.subr.bf16.mxu1 %v2850_v46 }
 0x499   :  { %1058 = vmatpush1.bf16.msra.mxu0 %v2318_v13  ;;  %1826 = vmatpush3.bf16.msra.mxu1 %v2385_v36 }
 0x49a   :  { %1059 = vmatprep.subr.bf16.mxu0 %v2322_v19  ;;  %1827 = vmatprep.subr.bf16.mxu1 %v2850_v46 }
 0x49d   :  { %1060 = vmatpush1.bf16.msra.mxu0 %v2327_v22  ;;  %1828 = vmatpush3.bf16.msra.mxu1 %v2393_v37 }
 0x49e   :  { %1061 = vmatprep.subr.bf16.mxu0 %v2330_v24  ;;  %1829 = vmatprep.subr.bf16.mxu1 %v2850_v46 }
 0x4a1   :  { %1062 = vmatpush1.bf16.msra.mxu0 %v2335_v25  ;;  %1830 = vmatpush3.bf16.msra.mxu1 %v2399_v38 }
 0x4a2   :  { %1063 = vmatprep.subr.bf16.mxu0 %v2338_v26  ;;  %1831 = vmatprep.subr.bf16.mxu1 %v2850_v46 }
 0x4a5   :  { %1064 = vmatpush1.bf16.msra.mxu0 %v2345_v27  ;;  %1832 = vmatpush3.bf16.msra.mxu1 %v2403_v39 }
 0x4a6   :  { %1065 = vmatprep.subr.bf16.mxu0 %v2347_v28  ;;  %1833 = vmatprep.subr.bf16.mxu1 %v2850_v46 }
 0x4a9   :  { %1066 = vmatpush1.bf16.msra.mxu0 %v2350_v29  ;;  %1834 = vmatpush3.bf16.msra.mxu1 %v2407_v40 }
 0x4aa   :  { %1067 = vmatprep.subr.bf16.mxu0 %v2353_v30  ;;  %1835 = vmatprep.subr.bf16.mxu1 %v2850_v46 }
 0x4ad   :  { %1068 = vmatpush1.bf16.msra.mxu0 %v2363_v31  ;;  %1836 = vmatpush3.bf16.msra.mxu1 %v2411_v41 }
 0x4ae   :  { %1164 = vmatprep.subr.bf16.mxu0 %v2303_v8  ;;  %1841 = vmatprep.subr.bf16.mxu1 %v2850_v46 }
 0x563   :  { %v976_v9 = vpop.f32.mrb[28].mxu0  ;;  %v1017_v10 = vpop.f32.mrb[28].mxu1 }
 0x564   :  { %v977_v11 = vadd.f32 %v976_v9, %v2484_v45  ;;  %v978_v12 = vpop.f32.mrb[29].mxu0  ;;  %v1819_v13 = vpop.f32.mrb[29].mxu1  ;;  %v1018_v16 = vadd.f32 %v1017_v10, %v2508_v44  ;;  %v2728_v9 = vld [vmem:[#allocation12 + $0x48] ss:$12 sps:$4 sm:$0xff]   ;;  %v2732_v10 = vld [vmem:[#allocation12 + $0x64] ss:$12 sps:$4 sm:$0xff]  }
 0x565   :  { %v979_v19 = vadd.f32 %v978_v12, %v2486_v47  ;;  %v980_v22 = vpop.f32.mrb[30].mxu0  ;;  %v1020_v24 = vpop.f32.mrb[30].mxu1 }
 0x566   :  { %v1023_v51 = vadd.f32 %v977_v11, %v2488_v54  ;;  %v981_v59 = vpop.f32.mrb[31].mxu0  ;;  %v1820_v62 = vpop.f32.mrb[31].mxu1 }
 0x567   :  { %v1030_v14 = vadd.f32 %v979_v19, %v2490_v5  ;;  %v2852_v19 = vld [vmem:[#allocation23_spill] sm:$0xff] }
 0x568   :  { %v1605_v2 = vmul.f32 -1.442695, %v1023_v51 }
 0x569   :  { %v1606_v8 = vmul.f32 -1.442695, %v1030_v14 }
 0x56a   :  { %2004 = vpow2.f32 %v1605_v2 }
 0x56b   :  { %2006 = vpow2.f32 %v1606_v8 }
 0x574   :  { %v2005_v33 = vpop.eup %2004 }
 0x575   :  { %v1027_v56 = vadd.f32 1.0, %v2005_v33  ;;  %v2007_v53 = vpop.eup %2006 }
 0x576   :  { %v1034_v17 = vadd.f32 1.0, %v2007_v53 }
 0x577   :  { %2008 = vrcp.f32 %v1027_v56 }
 0x578   :  { %2010 = vrcp.f32 %v1034_v17 }
 0x581   :  { %v2009_v58 = vpop.eup %2008 }
 0x582   :  { %v1037_v43 = vmul.f32 %v2009_v58, %v1018_v16  ;;  %v2011_v18 = vpop.eup %2010  ;;  %v2853_v16 = vld [vmem:[#allocation22_spill] sm:$0xff] }
 0x583   :  { %v1040_v34 = vsub.f32 1.0, %v2011_v18  ;;  %v1042_v15 = vmul.f32 %v2011_v18, %v2651_v6 }
 0x584   :  { %v1038_v54 = vadd.f32 %v1037_v43, %v2459_v57  ;;  %v2705_v57 = vld [vmem:[#allocation12 + $0x1c] ss:$12 sps:$4 sm:$0xff]  }
 0x586   :  { %2012 = vtanh.f32 %v1038_v54 }
 0x590   :  { %v2013_v5 = vpop.eup %2012 }
 0x591   :  { %v1041_v23 = vmul.f32 %v2013_v5, %v1040_v34 }
 0x593   :  { %v2697_v21 = vadd.f32 %v1042_v15, %v1041_v23  ;;  %v2058_v15 = vld [vmem:[#allocation12 + $0xac] ss:$12 sps:$4 sm:$0xff]  }
 0x595   :  { %v1052_v48 = vpack.c.bf16 %v2697_v21, %v2697_v21 }
 0x597   :  { %1086 = vmatmul.mubr.bf16.vlgmr.msra.gmra.mrb[32].mxu0 %v1052_v48  ;;  %1838 = vmatmul.mubr.bf16.vlgmr.msra.gmra.mrb[32].mxu1 %v1052_v48  ;;  %v1956_v48 = vld [vmem:[#allocation13] sm:$0xff]  }
 0x598   :  { %1165 = vmatpush1.bf16.msra.mxu0 %v2701_v1  ;;  %1842 = vmatpush3.bf16.msra.mxu1 %v2369_v32 }
 0x599   :  { %1166 = vmatprep.subr.bf16.mxu0 %v2705_v57  ;;  %1843 = vmatprep.subr.bf16.mxu1 %v2850_v46 }
 0x59a   :  { %1196 = vmatprep.mubr.bf16.mxu0 %v2851_v49  ;;  %1857 = vmatprep.mubr.msk.bf16.mxu1 %vm2191_vm1, %v2850_v46 }
 0x59c   :  { %1167 = vmatpush1.bf16.msra.mxu0 %v2712_v42  ;;  %1844 = vmatpush3.bf16.msra.mxu1 %v2377_v35 }
 0x59d   :  { %1168 = vmatprep.subr.bf16.mxu0 %v2716_v63  ;;  %1845 = vmatprep.subr.bf16.mxu1 %v2850_v46 }
 0x5a0   :  { %1169 = vmatpush1.bf16.msra.mxu0 %v2720_v50  ;;  %1846 = vmatpush3.bf16.msra.mxu1 %v2385_v36 }
 0x5a1   :  { %1170 = vmatprep.subr.bf16.mxu0 %v2724_v61  ;;  %1847 = vmatprep.subr.bf16.mxu1 %v2850_v46 }
 0x5a4   :  { %1171 = vmatpush1.bf16.msra.mxu0 %v2728_v9  ;;  %1848 = vmatpush3.bf16.msra.mxu1 %v2393_v37 }
 0x5a5   :  { %1172 = vmatprep.subr.bf16.mxu0 %v2732_v10  ;;  %1849 = vmatprep.subr.bf16.mxu1 %v2850_v46 }
 0x5a8   :  { %1173 = vmatpush1.bf16.msra.mxu0 %v2335_v25  ;;  %1850 = vmatpush3.bf16.msra.mxu1 %v2399_v38  ;;  %v2052_v25 = vld [vmem:[#allocation12 + $0x4] ss:$12 sps:$4 sm:$0xff]  }
 0x5a9   :  { %1174 = vmatprep.subr.bf16.mxu0 %v2338_v26  ;;  %1851 = vmatprep.subr.bf16.mxu1 %v2850_v46 }
 0x5ac   :  { %1175 = vmatpush1.bf16.msra.mxu0 %v2345_v27  ;;  %1852 = vmatpush3.bf16.msra.mxu1 %v2403_v39 }
 0x5ad   :  { %1176 = vmatprep.subr.bf16.mxu0 %v2347_v28  ;;  %1853 = vmatprep.subr.bf16.mxu1 %v2850_v46 }
 0x5b0   :  { %1177 = vmatpush1.bf16.msra.mxu0 %v2350_v29  ;;  %1854 = vmatpush3.bf16.msra.mxu1 %v2407_v40 }
 0x5b1   :  { %1178 = vmatprep.subr.bf16.mxu0 %v2353_v30  ;;  %1855 = vmatprep.subr.bf16.mxu1 %v2850_v46 }
 0x5b4   :  { %1179 = vmatpush1.bf16.msra.mxu0 %v2363_v31  ;;  %1856 = vmatpush3.bf16.msra.mxu1 %v2411_v41 }
 0x5b5   :  { %1275 = vmatprep.subr.bf16.mxu0 %v2052_v25  ;;  %1861 = vmatprep.subr.bf16.mxu1 %v2850_v46 }
 0x66a   :  { %v1087_v26 = vpop.f32.mrb[32].mxu0  ;;  %v1128_v27 = vpop.f32.mrb[32].mxu1 }
 0x66b   :  { %v1088_v28 = vadd.f32 %v1087_v26, %v2484_v45  ;;  %v1089_v11 = vpop.f32.mrb[33].mxu0  ;;  %v1839_v29 = vpop.f32.mrb[33].mxu1  ;;  %v1129_v56 = vadd.f32 %v1128_v27, %v2508_v44 }
 0x66c   :  { %v1090_v12 = vadd.f32 %v1089_v11, %v2486_v47  ;;  %v1091_v13 = vpop.f32.mrb[34].mxu0  ;;  %v1131_v30 = vpop.f32.mrb[34].mxu1 }
 0x66d   :  { %v1134_v22 = vadd.f32 %v1088_v28, %v2852_v19  ;;  %v1092_v24 = vpop.f32.mrb[35].mxu0  ;;  %v1840_v31 = vpop.f32.mrb[35].mxu1  ;;  %v2854_v19 = vld [vmem:[#allocation20_spill] sm:$0xff] }
 0x66e   :  { %v1141_v51 = vadd.f32 %v1090_v12, %v2496_v0 }
 0x66f   :  { %v1607_v59 = vmul.f32 -1.442695, %v1134_v22 }
 0x670   :  { %v1608_v62 = vmul.f32 -1.442695, %v1141_v51 }
 0x671   :  { %2014 = vpow2.f32 %v1607_v59 }
 0x672   :  { %2016 = vpow2.f32 %v1608_v62 }
 0x67b   :  { %v2015_v14 = vpop.eup %2014 }
 0x67c   :  { %v1138_v2 = vadd.f32 1.0, %v2015_v14  ;;  %v2017_v8 = vpop.eup %2016  ;;  %v1957_v14 = vld [vmem:[#allocation13 + $0x8] sm:$0xff]  }
 0x67d   :  { %v1145_v33 = vadd.f32 1.0, %v2017_v8  ;;  %v1958_v8 = vld [vmem:[#allocation13 + $0x10] sm:$0xff]  }
 0x67e   :  { %2018 = vrcp.f32 %v1138_v2  ;;  %v1388_v2 = vpack.c.bf16 %v2559_v4, %v2513_v52  ;;  %v1963_v52 = vld [vmem:[#allocation13 + $0x38] sm:$0xff]   ;;  %v1389_v4 = vpack.c.bf16 %v2651_v6, %v2605_v60 }
 0x67f   :  { %2020 = vrcp.f32 %v1145_v33  ;;  %v1959_v33 = vld [vmem:[#allocation13 + $0x18] sm:$0xff]  }
 0x688   :  { %v2019_v53 = vpop.eup %2018 }
 0x689   :  { %v1148_v17 = vmul.f32 %v2019_v53, %v1129_v56  ;;  %v2021_v43 = vpop.eup %2020  ;;  %v1960_v56 = vld [vmem:[#allocation13 + $0x20] sm:$0xff]   ;;  %v1961_v53 = vld [vmem:[#allocation13 + $0x28] sm:$0xff]  }
 0x68a   :  { %v1151_v54 = vsub.f32 1.0, %v2021_v43  ;;  %v1153_v34 = vmul.f32 %v2021_v43, %v2697_v21 }
 0x68b   :  { %v1149_v58 = vadd.f32 %v1148_v17, %v2853_v16  ;;  %v1962_v17 = vld [vmem:[#allocation13 + $0x30] sm:$0xff]  }
 0x68d   :  { %2022 = vtanh.f32 %v1149_v58 }
 0x697   :  { %v2023_v0 = vpop.eup %2022 }
 0x698   :  { %v1152_v18 = vmul.f32 %v2023_v0, %v1151_v54 }
 0x69a   :  { %v2758_v5 = vadd.f32 %v1153_v34, %v1152_v18 }
 0x69c   :  { %v1163_v23 = vpack.c.bf16 %v2758_v5, %v2758_v5  ;;  %v1390_v16 = vpack.c.bf16 %v2758_v5, %v2697_v21 }
 0x69e   :  { %1197 = vmatmul.mubr.bf16.vlgmr.msra.gmra.mrb[36].mxu0 %v1163_v23  ;;  %1858 = vmatmul.mubr.bf16.vlgmr.msra.gmra.mrb[36].mxu1 %v1163_v23 }
 0x69f   :  { %1276 = vmatpush1.bf16.msra.mxu0 %v2701_v1  ;;  %1862 = vmatpush3.bf16.msra.mxu1 %v2369_v32  ;;  %v2053_v32 = vld [vmem:[#allocation12 + $0x60] ss:$12 sps:$4 sm:$0xff]  }
 0x6a0   :  { %1277 = vmatprep.subr.bf16.mxu0 %v2705_v57  ;;  %1863 = vmatprep.subr.bf16.mxu1 %v2850_v46 }
 0x6a1   :  { %1307 = vmatprep.mubr.bf16.mxu0 %v2851_v49  ;;  %1877 = vmatprep.mubr.msk.bf16.mxu1 %vm2191_vm1, %v2850_v46  ;;  %v2056_v49 = vld [vmem:[#allocation12 + $0x94] ss:$12 sps:$4 sm:$0xff]  }
 0x6a3   :  { %1278 = vmatpush1.bf16.msra.mxu0 %v2712_v42  ;;  %1864 = vmatpush3.bf16.msra.mxu1 %v2377_v35  ;;  %v2054_v35 = vld [vmem:[#allocation12 + $0x7c] ss:$12 sps:$4 sm:$0xff]  }
 0x6a4   :  { %1279 = vmatprep.subr.bf16.mxu0 %v2716_v63  ;;  %1865 = vmatprep.subr.bf16.mxu1 %v2850_v46 }
 0x6a7   :  { %1280 = vmatpush1.bf16.msra.mxu0 %v2720_v50  ;;  %1866 = vmatpush3.bf16.msra.mxu1 %v2385_v36  ;;  %v2055_v36 = vld [vmem:[#allocation12 + $0x78] ss:$12 sps:$4 sm:$0xff]  }
 0x6a8   :  { %1281 = vmatprep.subr.bf16.mxu0 %v2724_v61  ;;  %1867 = vmatprep.subr.bf16.mxu1 %v2850_v46 }
 0x6ab   :  { %1282 = vmatpush1.bf16.msra.mxu0 %v2728_v9  ;;  %1868 = vmatpush3.bf16.msra.mxu1 %v2393_v37  ;;  %v2057_v37 = vld [vmem:[#allocation12 + $0x90] ss:$12 sps:$4 sm:$0xff]  }
 0x6ac   :  { %1283 = vmatprep.subr.bf16.mxu0 %v2732_v10  ;;  %1869 = vmatprep.subr.bf16.mxu1 %v2850_v46 }
 0x6af   :  { %1284 = vmatpush1.bf16.msra.mxu0 %v2053_v32  ;;  %1870 = vmatpush3.bf16.msra.mxu1 %v2399_v38  ;;  %v2059_v38 = vld [vmem:[#allocation12 + $0xa8] ss:$12 sps:$4 sm:$0xff]  }
 0x6b0   :  { %1285 = vmatprep.subr.bf16.mxu0 %v2054_v35  ;;  %1871 = vmatprep.subr.bf16.mxu1 %v2850_v46 }
 0x6b3   :  { %1286 = vmatpush1.bf16.msra.mxu0 %v2055_v36  ;;  %1872 = vmatpush3.bf16.msra.mxu1 %v2403_v39 }
 0x6b4   :  { %1287 = vmatprep.subr.bf16.mxu0 %v2056_v49  ;;  %1873 = vmatprep.subr.bf16.mxu1 %v2850_v46 }
 0x6b7   :  { %1288 = vmatpush1.bf16.msra.mxu0 %v2057_v37  ;;  %1874 = vmatpush3.bf16.msra.mxu1 %v2407_v40 }
 0x6b8   :  { %1289 = vmatprep.subr.bf16.mxu0 %v2058_v15  ;;  %1875 = vmatprep.subr.bf16.mxu1 %v2850_v46 }
 0x6bb   :  { %1290 = vmatpush1.bf16.msra.mxu0 %v2059_v38  ;;  %1876 = vmatpush3.bf16.msra.mxu1 %v2411_v41 }
 0x6bc   :  { %1881 = vmatprep.subr.bf16.mxu0 %v1956_v48 }
 0x771   :  { %v1198_v1 = vpop.f32.mrb[36].mxu0  ;;  %v1239_v39 = vpop.f32.mrb[36].mxu1 }
 0x772   :  { %v1199_v57 = vadd.f32 %v1198_v1, %v2484_v45  ;;  %v1200_v42 = vpop.f32.mrb[37].mxu0  ;;  %v1859_v63 = vpop.f32.mrb[37].mxu1  ;;  %v1240_v12 = vadd.f32 %v1239_v39, %v2508_v44 }
 0x773   :  { %v1201_v50 = vadd.f32 %v1200_v42, %v2486_v47  ;;  %v1202_v61 = vpop.f32.mrb[38].mxu0  ;;  %v1242_v40 = vpop.f32.mrb[38].mxu1 }
 0x774   :  { %v1245_v9 = vadd.f32 %v1199_v57, %v2498_v3  ;;  %v1203_v10 = vpop.f32.mrb[39].mxu0  ;;  %v1860_v46 = vpop.f32.mrb[39].mxu1 }
 0x775   :  { %v1252_v25 = vadd.f32 %v1201_v50, %v2500_v55 }
 0x776   :  { %v1609_v26 = vmul.f32 -1.442695, %v1245_v9 }
 0x777   :  { %v1610_v41 = vmul.f32 -1.442695, %v1252_v25 }
 0x778   :  { %2024 = vpow2.f32 %v1609_v26 }
 0x779   :  { %2026 = vpow2.f32 %v1610_v41 }
 0x782   :  { %v2025_v27 = vpop.eup %2024 }
 0x783   :  { %v1249_v28 = vadd.f32 1.0, %v2025_v27  ;;  %v2027_v11 = vpop.eup %2026 }
 0x784   :  { %v1256_v29 = vadd.f32 1.0, %v2027_v11 }
 0x785   :  { %2028 = vrcp.f32 %v1249_v28 }
 0x786   :  { %2030 = vrcp.f32 %v1256_v29 }
 0x78f   :  { %v2029_v13 = vpop.eup %2028 }
 0x790   :  { %v1259_v30 = vmul.f32 %v2029_v13, %v1240_v12  ;;  %v2031_v22 = vpop.eup %2030 }
 0x791   :  { %v1262_v24 = vsub.f32 1.0, %v2031_v22  ;;  %v1264_v51 = vmul.f32 %v2031_v22, %v2758_v5 }
 0x792   :  { %v1260_v3 = vadd.f32 %v1259_v30, %v2854_v19 }
 0x794   :  { %2032 = vtanh.f32 %v1260_v3 }
 0x79e   :  { %v2033_v55 = vpop.eup %2032 }
 0x79f   :  { %v1263_v31 = vmul.f32 %v2033_v55, %v1262_v24 }
 0x7a1   :  { %v2795_v59 = vadd.f32 %v1264_v51, %v1263_v31 }
 0x7a3   :  { %v1274_v62 = vpack.c.bf16 %v2795_v59, %v2795_v59 }
 0x7a5   :  { %1308 = vmatmul.mubr.bf16.vlgmr.msra.gmra.mrb[40].mxu0 %v1274_v62  ;;  %1878 = vmatmul.mubr.bf16.vlgmr.msra.gmra.mrb[40].mxu1 %v1274_v62 }
 0x7a6   :  { %1882 = vmatpush3.bf16.msra.mxu0 %v1956_v48  ;;  %1897 = vmatprep.mubr.bf16.mxu0 %v1388_v2 }
 0x7a7   :  { %1883 = vmatprep.subr.bf16.mxu0 %v1957_v14 }
 0x7aa   :  { %1884 = vmatpush3.bf16.msra.mxu0 %v1957_v14 }
 0x7ab   :  { %1885 = vmatprep.subr.bf16.mxu0 %v1958_v8 }
 0x7ae   :  { %1886 = vmatpush3.bf16.msra.mxu0 %v1958_v8 }
 0x7af   :  { %1887 = vmatprep.subr.bf16.mxu0 %v1959_v33 }
 0x7b2   :  { %1888 = vmatpush3.bf16.msra.mxu0 %v1959_v33 }
 0x7b3   :  { %1889 = vmatprep.subr.bf16.mxu0 %v1960_v56 }
 0x7b6   :  { %1890 = vmatpush3.bf16.msra.mxu0 %v1960_v56 }
 0x7b7   :  { %1891 = vmatprep.subr.bf16.mxu0 %v1961_v53 }
 0x7ba   :  { %1892 = vmatpush3.bf16.msra.mxu0 %v1961_v53 }
 0x7bb   :  { %1893 = vmatprep.subr.bf16.mxu0 %v1962_v17 }
 0x7be   :  { %1894 = vmatpush3.bf16.msra.mxu0 %v1962_v17 }
 0x7bf   :  { %1895 = vmatprep.subr.bf16.mxu0 %v1963_v52 }
 0x7c2   :  { %1896 = vmatpush3.bf16.msra.mxu0 %v1963_v52 }
 0x7c5   :  { %1898 = vmatmul.mubr.bf16.vlgmr.msra.gmra.mrb[44].mxu0 %v1389_v4 }
 0x7c6   :  { %1901 = vmatprep.mubr.bf16.mxu0 %v1390_v16 }
 0x878   :  { %v1309_v58 = vpop.f32.mrb[40].mxu0  ;;  %v1350_v43 = vpop.f32.mrb[40].mxu1 }
 0x879   :  { %v1310_v54 = vadd.f32 %v1309_v58, %v2484_v45  ;;  %v1311_v0 = vpop.f32.mrb[41].mxu0  ;;  %v1879_v18 = vpop.f32.mrb[41].mxu1  ;;  %v1351_v38 = vadd.f32 %v1350_v43, %v2508_v44 }
 0x87a   :  { %v1312_v34 = vadd.f32 %v1311_v0, %v2486_v47  ;;  %v1313_v23 = vpop.f32.mrb[42].mxu0  ;;  %v1353_v32 = vpop.f32.mrb[42].mxu1 }
 0x87b   :  { %v1356_v35 = vadd.f32 %v1310_v54, %v2502_v7  ;;  %v1314_v36 = vpop.f32.mrb[43].mxu0  ;;  %v1880_v49 = vpop.f32.mrb[43].mxu1  ;;  %v1613_v7 = vld [vmem:[%s2838_s7] ss:$0 sm:$0xff]  ;;  %s2192_s7 = smov [#allocation15]  }
 0x87c   :  { %v1363_v60 = vadd.f32 %v1312_v34, %v2504_v20  ;;  %v2855_v20 = vld [vmem:[#allocation21_spill] sm:$0xff]  ;;  %s1541_s13 = sshll.u32 %s2192_s7, 4  ;;  %s1542_s13 = int_to_ptr.vmem [resolvable:$true] %s1541_s13 }
 0x87d   :  { %v1611_v6 = vmul.f32 -1.442695, %v1356_v35  ;;  %s2148_s16 = scalar_lea.vmem %s1542_s13, 1024  ;;  %p2153_p5 = scmp.lt.s32.totalorder %s1542_s13, %s1542_s13 }
 0x87e   :  { %v1612_v21 = vmul.f32 -1.442695, %v1363_v60  ;;  %p2149_p4 = scmp.ne.s32.totalorder %s1542_s13, %s2148_s16  ;;  %p2154_p6 = scmp.lt.s32.totalorder %s2148_s16, %s2148_s16 }
 0x87f   :  { %2034 = vpow2.f32 %v1611_v6 }
 0x880   :  { %2036 = vpow2.f32 %v1612_v21  ;;  %p2155_p7 = por %p2154_p6, %p2153_p5 }
 0x882   :  { %p2156_p8 = pnand %p2155_p7, %p2149_p4 }
 0x889   :  { %v2035_v5 = vpop.eup %2034 }
 0x88a   :  { %v1360_v37 = vadd.f32 1.0, %v2035_v5  ;;  %v2037_v45 = vpop.eup %2036 }
 0x88b   :  { %v1367_v15 = vadd.f32 1.0, %v2037_v45 }
 0x88c   :  { %2038 = vrcp.f32 %v1360_v37 }
 0x88d   :  { %2040 = vrcp.f32 %v1367_v15 }
 0x896   :  { %v2039_v47 = vpop.eup %2038 }
 0x897   :  { %v1370_v48 = vmul.f32 %v2039_v47, %v1351_v38  ;;  %v2041_v9 = vpop.eup %2040 }
 0x898   :  { %v1899_v1 = vpop.f32.mrb[44].mxu0  ;;  %v1373_v10 = vsub.f32 1.0, %v2041_v9  ;;  %v1375_v26 = vmul.f32 %v2041_v9, %v2795_v59 }
 0x899   :  { %v1371_v39 = vadd.f32 %v1370_v48, %v2855_v20  ;;  %v1506_v57 = vadd.f32 %v1899_v1, %v1613_v7  ;;  %v1497_v42 = vpop.f32.mrb[45].mxu0 }
 0x89a   :  { %v1498_v63 = vadd.f32 %v1613_v7, %v1497_v42  ;;  %v1900_v50 = vpop.f32.mrb[46].mxu0 }
 0x89b   :  { %2042 = vtanh.f32 %v1371_v39  ;;  %1530 = vst [vmem:[#allocation15 + $0x10] sm:$0xff] %v1506_v57  ;;  %v1509_v61 = vadd.f32 %v1900_v50, %v1613_v7  ;;  %v1500_v40 = vpop.f32.mrb[47].mxu0 }
 0x89c   :  { %1528 = vst [vmem:[#allocation15] sm:$0xff] %v1498_v63  ;;  %v1501_v44 = vadd.f32 %v1613_v7, %v1500_v40 }
 0x89d   :  { %1531 = vst [vmem:[#allocation15 + $0x18] sm:$0xff] %v1509_v61 }
 0x89e   :  { %1529 = vst [vmem:[#allocation15 + $0x8] sm:$0xff] %v1501_v44 }
 0x8a5   :  { %v2043_v46 = vpop.eup %2042 }
 0x8a6   :  { %v1374_v25 = vmul.f32 %v2043_v46, %v1373_v10 }
 0x8a8   :  { %v1376_v41 = vadd.f32 %v1375_v26, %v1374_v25 }
 0x8aa   :  { %v1391_v27 = vpack.c.bf16 %v1376_v41, %v2795_v59 }
 0x8ac   :  { %1902 = vmatmul.mubr.bf16.gmra.mrb[48].mxu0 %v1391_v27 }
 0x97f   :  { %v1903_v28 = vpop.f32.mrb[48].mxu0 }
 0x980   :  { %v1522_v11 = vadd.f32 %v1903_v28, %v1613_v7  ;;  %v1513_v29 = vpop.f32.mrb[49].mxu0 }
 0x981   :  { %v1514_v12 = vadd.f32 %v1613_v7, %v1513_v29  ;;  %v1904_v13 = vpop.f32.mrb[50].mxu0 }
 0x982   :  { %1534 = vst [vmem:[#allocation15 + $0x30] sm:$0xff] %v1522_v11  ;;  %v1525_v30 = vadd.f32 %v1904_v13, %v1613_v7  ;;  %v1516_v19 = vpop.f32.mrb[51].mxu0 }
 0x983   :  { %1532 = vst [vmem:[#allocation15 + $0x20] sm:$0xff] %v1514_v12  ;;  %v1517_v3 = vadd.f32 %v1613_v7, %v1516_v19 }
 0x984   :  { %1535 = vst [vmem:[#allocation15 + $0x38] sm:$0xff] %v1525_v30 }
 0x985   :  { %1533 = vst [vmem:[#allocation15 + $0x28] sm:$0xff] %v1517_v3 }
 0x986   :  { %2159 = shalt.err (!%p2156_p8)
}
 0x987   :  { %s2160_s20 = scalar_lea.hbm %s2839_s8, 1024 }
 0x988   :  { %p2161_p9 = scmp.ne.s32.totalorder %s2839_s8, %s2160_s20  ;;  %p2164_p10 = scmp.lt.u32.totalorder %s2160_s20, %s2839_s8 }
 0x98a   :  { %p2166_p11 = pnand %p2164_p10, %p2161_p9 }
 0x98c   :  { %2169 = shalt.err (!%p2166_p11)
}
 0x98d   :  { %1547 = dma.vmem_to_hbm [thread:$0]  %s1542_s13, 1024, %s2839_s8, [#allocation9], %s2182_s2, %s2182_s2, %s2183_s27  }
 0x98e   :  { %2176 = dma.done.wait [#allocation9], 1024  }
 0x98f   :  { %2177 = vsyncadd [#allocation9], 4294966272 }
 0x990   :  { %1551 = vsyncpa [#allocation8], 1 }
 0x991   :  { %1552 = vsyncpa [#allocation11], 1 }
 0x992   :  { %1553 = vsyncpa [#allocation14], 1 }
 0x993   :  { %1554 = vsyncpa [#allocation9], 1 }

</bundles_post_ra>
